<compile_context>
chip_gen: v7x
topology: tpu7x:2x2x1
jax: 0.10.0
libtpu: 0.0.40
codegen_flags: <defaults>
</compile_context>

<pallas_src>
import functools
import math

import jax
import jax.numpy as jnp
from jax.scipy.linalg import solve_triangular
from jax.experimental import pallas as pl
from jax.experimental.pallas import tpu as pltpu


LANE = 128                  # lane padding for weight N dims
SUBLANE = 8                 # batch tiles are multiples of 8 sublanes
DEFAULT_BATCH_TILE = 512    # review: 512-row tiles ~85% of HBM roofline on v6e


def _round_up(x, m):
    return ((x + m - 1) // m) * m


def _pick_tile(m, batch_tile):
    """Batch tile: multiple of 8 sublanes, <= batch_tile, and small enough
    that the "parallel" grid has >= 2 steps whenever the batch allows it
    (v7x has 2 TensorCores; a 1-step grid leaves one of them idle)."""
    m8 = _round_up(max(m, 1), SUBLANE)
    tm = _round_up(max(SUBLANE, min(batch_tile, m8)), SUBLANE)
    if m8 > SUBLANE and pl.cdiv(m, tm) < 2:
        tm = _round_up(pl.cdiv(m8, 2), SUBLANE)
    return tm


# ----------------------------------------------------------------------------
# In-kernel MLP chain: all linear+bias+activation layers of one MLP, operating
# on a VMEM batch tile with VMEM-resident (lane-padded, bf16) weights.
# ----------------------------------------------------------------------------
def _mlp_chain(h, wb_refs, activation):
    """h: (tm, k) value whose width k equals the first weight's K dim.
    Weights may be bf16 (cast of h happens at the dot input); accumulation is
    f32; activations run in f32.  Returns (tm, padded_out) f32 whose columns
    beyond the true output width are exactly zero."""
    nl = len(wb_refs) // 2
    for l in range(nl):
        w = wb_refs[2 * l][...]
        b = wb_refs[2 * l + 1][...]
        y = jnp.dot(h.astype(w.dtype), w, preferred_element_type=jnp.float32) + b
        if l < nl - 1:                      # final layer stays linear
            if activation == "nn.ReLU":
                y = jnp.maximum(y, 0.0)
            elif activation == "nn.Tanh":
                y = jnp.tanh(y)
            elif activation is not None:
                # TODO(synk): only ReLU/Tanh activation classnames are mapped.
                raise NotImplementedError(activation)
        h = y
    return h


# ----------------------------------------------------------------------------
# Generic single-MLP fused kernel (used when the whole-DAN fusion is not
# applicable, e.g. custom Constructor configurations).
# ----------------------------------------------------------------------------
def _single_mlp_kernel(*refs, activation, out_dim):
    x_ref, o_ref, wb = refs[0], refs[-1], refs[1:-1]
    h = _mlp_chain(x_ref[...], wb, activation)
    o_ref[...] = h[:, :out_dim].astype(o_ref.dtype)


def fused_mlp_forward(x, fc):
    """y = MLP(x), all layers fused in ONE pallas_call; x and y keep their
    true feature widths (no host pad / trailing slice)."""
    m, k = x.shape
    out_dim = fc.layers[-1]
    tm = _pick_tile(m, fc.batch_tile)
    grid_m = pl.cdiv(m, tm)

    kernel = functools.partial(_single_mlp_kernel,
                               activation=fc.activation, out_dim=out_dim)

    in_specs = [pl.BlockSpec((tm, k), lambda i: (i, 0))]
    args = [x]
    for wp, bp in fc.padded_params:
        # Pinned at (0, 0): fetched once, VMEM-resident across the batch grid.
        # TODO(synk): if hidden widths scale past ~1k, single-buffer these
        # (pipeline_mode=pl.Buffered(1)), pad hidden dims to 256 on v6e/v7x
        # and set vmem_limit_bytes explicitly (v7x has 64 MiB VMEM).
        in_specs.append(pl.BlockSpec(wp.shape, lambda i: (0, 0)))
        in_specs.append(pl.BlockSpec(bp.shape, lambda i: (0, 0)))
        args += [wp, bp]

    return pl.pallas_call(
        kernel,
        out_shape=jax.ShapeDtypeStruct((m, out_dim), jnp.float32),
        grid=(grid_m,),
        in_specs=in_specs,
        out_specs=pl.BlockSpec((tm, out_dim), lambda i: (i, 0)),
        compiler_params=pltpu.CompilerParams(
            dimension_semantics=("parallel",)),
    )(*args)


# ----------------------------------------------------------------------------
# Fully fused DAN step:   hb = b(ha); vec_a = c(ha); vec_b = c(hb);
#                         a_out = [a(hb); a(y)]     — one pallas_call.
# ----------------------------------------------------------------------------
def _dan_fused_kernel(*refs, nb, nc, na, act_b, act_c, act_a,
                      b_out, a_out, c_out):
    ha_ref, y_ref = refs[0], refs[1]
    p = 2
    b_wb = refs[p:p + 2 * nb]; p += 2 * nb
    c_wb = refs[p:p + 2 * nc]; p += 2 * nc
    a_wb = refs[p:p + 2 * na]; p += 2 * na
    out_a_ref, out_c_ref = refs[p], refs[p + 1]

    ha = ha_ref[...]
    yv = y_ref[...]

    hb_full = _mlp_chain(ha, b_wb, act_b)      # (tm, padded) f32, zero tail
    hb = hb_full[:, :b_out]                    # true-width activations

    vec_a = _mlp_chain(ha, c_wb, act_c)
    vec_b = _mlp_chain(hb, c_wb, act_c)
    a_hb = _mlp_chain(hb, a_wb, act_a)
    a_y = _mlp_chain(yv, a_wb, act_a)

    out_a_ref[0, :, :] = a_hb[:, :a_out].astype(out_a_ref.dtype)
    out_a_ref[1, :, :] = a_y[:, :a_out].astype(out_a_ref.dtype)
    out_c_ref[0, :, :] = vec_a[:, :c_out].astype(out_c_ref.dtype)
    out_c_ref[1, :, :] = vec_b[:, :c_out].astype(out_c_ref.dtype)


def dan_fused_forward(ha, y, b_fc, c_fc, a_fc, batch_tile):
    m, kh = ha.shape
    ky = y.shape[1]
    b_out = b_fc.layers[-1]
    a_out = a_fc.layers[-1]
    c_out = c_fc.layers[-1]

    tm = _pick_tile(m, batch_tile)
    grid_m = pl.cdiv(m, tm)

    kernel = functools.partial(
        _dan_fused_kernel,
        nb=len(b_fc.padded_params), nc=len(c_fc.padded_params),
        na=len(a_fc.padded_params),
        act_b=b_fc.activation, act_c=c_fc.activation, act_a=a_fc.activation,
        b_out=b_out, a_out=a_out, c_out=c_out)

    in_specs = [pl.BlockSpec((tm, kh), lambda i: (i, 0)),
                pl.BlockSpec((tm, ky), lambda i: (i, 0))]
    args = [ha, y]
    for fc in (b_fc, c_fc, a_fc):
        for wp, bp in fc.padded_params:
            # Pinned weight/bias blocks: DMA'd once, reused by every tile.
            # TODO(synk): at large hidden widths use pipeline_mode=pl.Buffered(1)
            # on these constant blocks and set vmem_limit_bytes (v7x: 64 MiB).
            in_specs.append(pl.BlockSpec(wp.shape, lambda i: (0, 0)))
            in_specs.append(pl.BlockSpec(bp.shape, lambda i: (0, 0)))
            args += [wp, bp]

    out_shapes = (jax.ShapeDtypeStruct((2, m, a_out), jnp.float32),
                  jax.ShapeDtypeStruct((2, m, c_out), jnp.float32))
    out_specs = (pl.BlockSpec((2, tm, a_out), lambda i: (0, i, 0)),
                 pl.BlockSpec((2, tm, c_out), lambda i: (0, i, 0)))

    a_pair, c_pair = pl.pallas_call(
        kernel,
        out_shape=out_shapes,
        grid=(grid_m,),
        in_specs=in_specs,
        out_specs=out_specs,
        compiler_params=pltpu.CompilerParams(
            dimension_semantics=("parallel",)),
    )(*args)

    # (2, M, h) row-major flatten == torch.cat((a(hb), a(y)), dim=0)
    ha_new = a_pair.reshape(2 * m, a_out)
    return ha_new, c_pair[0], c_pair[1]


# ----------------------------------------------------------------------------
# FullyConnected MLP (the loc network used inside the Constructors)
# ----------------------------------------------------------------------------
class FullyConnected:
    """layers: list of widths, e.g. [8, 32, 32, 8]
    activation_classname: e.g. "nn.ReLU" (applied to all but the last layer)."""

    def __init__(self, layers, activation_classname, key,
                 batch_tile=DEFAULT_BATCH_TILE, param_dtype=jnp.bfloat16):
        self.layers = list(layers)
        self.activation = activation_classname
        self.batch_tile = batch_tile
        self.param_dtype = param_dtype
        self.params = []          # true-shape f32 params (pure-JAX reference)
        self.padded_params = []   # lane-padded (N dims), bf16 weights / f32 bias
        for li, (d0, d1) in enumerate(zip(self.layers[:-1], self.layers[1:])):
            key, kw, kb = jax.random.split(key, 3)
            bound = 1.0 / math.sqrt(d0)          # PyTorch nn.Linear default init
            w = jax.random.uniform(kw, (d0, d1), jnp.float32, -bound, bound)
            b = jax.random.uniform(kb, (d1,), jnp.float32, -bound, bound)
            self.params.append((w, b))
            # First layer keeps its TRUE K (input width); hidden/output N dims
            # (and the matching K of following layers) are 128-lane padded.
            k_dim = d0 if li == 0 else _round_up(d0, LANE)
            n_dim = _round_up(d1, LANE)
            wp = (jnp.zeros((k_dim, n_dim), jnp.float32)
                  .at[:d0, :d1].set(w).astype(param_dtype))
            bp = jnp.zeros((1, n_dim), jnp.float32).at[0, :d1].set(b)
            self.padded_params.append((wp, bp))

    def __call__(self, h):
        return fused_mlp_forward(h, self)


_LOC_CLASSES = {"FullyConnected": FullyConnected}


# ----------------------------------------------------------------------------
# Gaussian (JAX port of the Mvn-from-vector construction)
# ----------------------------------------------------------------------------
class Gaussian:
    """Gaussian built from (x_dim, vec): loc = vec[:, :x_dim]; if vec has
    x_dim+1 columns, scale_tril = exp(vec[:, x_dim]) * I, otherwise the lower
    triangle is filled diagonal-by-diagonal (main diagonal clipped to [-8, 8]
    then exponentiated)."""

    def __init__(self, x_dim, vec):
        mb, vec_dim = vec.shape
        loc = vec[:, :x_dim]
        if vec_dim == x_dim + 1:
            scale = jnp.exp(vec[:, x_dim])
            scale_tril = scale[:, None, None] * jnp.eye(x_dim, dtype=vec.dtype)[None]
        else:
            std_values = vec[:, x_dim:]
            inds = self.vec_to_inds(x_dim, vec_dim)
            line_idx = jnp.array(inds[0])
            col_idx = jnp.array(inds[1])
            diag = jnp.array(inds[0]) == jnp.array(inds[1])
            vals = jnp.where(diag[None, :],
                             jnp.exp(jnp.clip(std_values, -8.0, 8.0)),
                             std_values)
            scale_tril = (jnp.zeros((mb, x_dim, x_dim), vec.dtype)
                          .at[:, line_idx, col_idx].set(vals))
        self.loc = loc
        self.mean = loc
        self.scale_tril = scale_tril

    @staticmethod
    def vec_to_inds(x_dim, vec_dim):
        ldiag, d, c = x_dim, 0, 0
        inds = [[], []]
        for _ in range(vec_dim - x_dim):
            inds[0].append(c + d)
            inds[1].append(c)
            if c == ldiag - 1:
                ldiag += -1
                c = 0
                d += 1
            else:
                c += 1
        return inds


# ----------------------------------------------------------------------------
# Constructor: builds a function / conditional Gaussian from a classname
# ----------------------------------------------------------------------------
class Constructor:
    def __init__(self, loc_classname, loc_kwargs, gauss_dim=None,
                 scale_vec_classname=None, scale_vec_kwargs=None):
        self.gauss_dim = gauss_dim
        self.loc = _LOC_CLASSES[loc_classname](**loc_kwargs)
        if scale_vec_classname is not None:
            self.scale_vec = _LOC_CLASSES[scale_vec_classname](**scale_vec_kwargs)
        else:
            self.scale_vec = None

    def __call__(self, *args):
        lc = self.loc(*args)
        if self.gauss_dim is not None:
            if self.scale_vec is not None:
                sc = self.scale_vec(*args)
                return Gaussian(self.gauss_dim, jnp.concatenate((lc, sc), axis=1))
            return Gaussian(self.gauss_dim, lc)
        return lc


# ----------------------------------------------------------------------------
# DAN
# ----------------------------------------------------------------------------
class DAN:
    def __init__(self, a_kwargs, b_kwargs, c_kwargs):
        self.a = Constructor(**a_kwargs)
        self.b = Constructor(**b_kwargs)
        self.c = Constructor(**c_kwargs)
        self.scores = {'RMSE_b': [], 'RMSE_a': [],
                       'LOGPDF_b': [], 'LOGPDF_a': [], 'LOSS': []}

    # -------------------------------------------------------------------
    def estimate_log_loss(self, x, gaussian_dist):
        # TODO(synk): the original PyTorch method accumulates this quadratic
        # form but has no return statement; we return it so `loss` is defined.
        # scale_tril is already a Cholesky factor, so use a triangular solve
        # instead of forming/inverting the covariance (same value, safer).
        diff = x - gaussian_dist.loc
        z = solve_triangular(gaussian_dist.scale_tril, diff[..., None], lower=True)
        return jnp.sum(z * z)

    # -------------------------------------------------------------------
    def _fusable(self, ha, y):
        a, b, c = self.a, self.b, self.c
        if not (isinstance(a.loc, FullyConnected) and
                isinstance(b.loc, FullyConnected) and
                isinstance(c.loc, FullyConnected)):
            return False
        if (a.gauss_dim is not None or b.gauss_dim is not None or
                a.scale_vec is not None or b.scale_vec is not None or
                c.scale_vec is not None):
            return False
        if ha.ndim != 2 or y.ndim != 2 or ha.shape[0] != y.shape[0]:
            return False
        if ha.shape[1] != b.loc.layers[0] or ha.shape[1] != c.loc.layers[0]:
            return False
        if (b.loc.layers[-1] != a.loc.layers[0] or
                b.loc.layers[-1] != c.loc.layers[0] or
                y.shape[1] != a.loc.layers[0]):
            return False
        return True

    def _c_output(self, vec):
        if self.c.gauss_dim is not None:
            return Gaussian(self.c.gauss_dim, vec)
        return vec

    # -------------------------------------------------------------------
    def forward(self, ha, x, y):
        if self._fusable(ha, y):
            bt = min(self.a.loc.batch_tile, self.b.loc.batch_tile,
                     self.c.loc.batch_tile)
            ha_new, vec_a, vec_b = dan_fused_forward(
                ha, y, self.b.loc, self.c.loc, self.a.loc, bt)
            pdf_a = self._c_output(vec_a)
            pdf_b = self._c_output(vec_b)
        else:
            hb = self.b(ha)
            pdf_a = self.c(ha)
            # Matches torch.cat((hb, y)) (default dim=0) — requires equal widths.
            hb_hat = jnp.concatenate((hb, y), axis=0)
            ha_new = self.a(hb_hat)
            pdf_b = self.c(hb)

        logpdf_a = self.estimate_log_loss(x, pdf_a)
        logpdf_b = self.estimate_log_loss(x, pdf_b)
        loss = logpdf_a + logpdf_b
        if logpdf_a is not None:
            inv_sqrt = x.shape[1] ** (-0.5)
            # Device scalars only — no float()/item() host syncs in the hot
            # loop; convert with scores_as_floats() outside the training loop.
            self.scores['RMSE_b'].append(jnp.mean(
                jnp.linalg.norm(pdf_b.mean - x, axis=1) * inv_sqrt))
            self.scores['RMSE_a'].append(jnp.mean(
                jnp.linalg.norm(pdf_a.mean - x, axis=1) * inv_sqrt))
            self.scores['LOGPDF_b'].append(logpdf_b)
            self.scores['LOGPDF_a'].append(logpdf_a)
            self.scores['LOSS'].append(loss)
        return loss, ha_new

    __call__ = forward

    def scores_as_floats(self):
        return {k: [float(v) for v in vals] for k, vals in self.scores.items()}

    def clear_scores(self):
        for v in self.scores.values():
            v.clear()


# ----------------------------------------------------------------------------
# Demo / smoke test
# ----------------------------------------------------------------------------
if __name__ == "__main__":
    key = jax.random.PRNGKey(0)
    key, k_ha, k_x, k_y, ka, kb_, kc = jax.random.split(key, 7)

    mb = 16       # batch
    x_dim = 4     # state dimension
    h_dim = 8     # ha / hb / y dimension (cat along dim 0 -> equal widths)

    # Small batch tile so the fused DAN kernel runs a 2-step "parallel" grid;
    # real workloads would use the 512-row default tiles.
    bt = 8
    a_kwargs = dict(loc_classname="FullyConnected",
                    loc_kwargs=dict(layers=[h_dim, 32, 32, h_dim],
                                    activation_classname="nn.ReLU",
                                    key=ka, batch_tile=bt))
    b_kwargs = dict(loc_classname="FullyConnected",
                    loc_kwargs=dict(layers=[h_dim, 32, 32, h_dim],
                                    activation_classname="nn.ReLU",
                                    key=kb_, batch_tile=bt))
    c_kwargs = dict(loc_classname="FullyConnected",
                    loc_kwargs=dict(layers=[h_dim, 32, x_dim + 1],
                                    activation_classname="nn.ReLU",
                                    key=kc, batch_tile=bt),
                    gauss_dim=x_dim)

    dan = DAN(a_kwargs, b_kwargs, c_kwargs)

    ha0 = jax.random.normal(k_ha, (mb, h_dim), jnp.float32)
    x = jax.random.normal(k_x, (mb, x_dim), jnp.float32)
    y = jax.random.normal(k_y, (mb, h_dim), jnp.float32)

    loss, ha_new = dan(ha0, x, y)
    loss = jax.block_until_ready(loss)
    ha_new = jax.block_until_ready(ha_new)
    _ = dan.scores_as_floats()     # host conversion outside the hot loop

    # Also exercise the generic single-MLP fused path (fallback code path).
    hb_pallas = jax.block_until_ready(dan.b.loc(ha0))

    # -------- pure-JAX reference (bf16 weights/activations, f32 accumulate) --
    def mlp_ref(h, fc):
        n = len(fc.params)
        for li, (w, b) in enumerate(fc.params):
            yv = jnp.dot(h.astype(fc.param_dtype), w.astype(fc.param_dtype),
                         preferred_element_type=jnp.float32) + b
            if li < n - 1:
                if fc.activation == "nn.ReLU":
                    yv = jnp.maximum(yv, 0.0)
                elif fc.activation == "nn.Tanh":
                    yv = jnp.tanh(yv)
            h = yv
        return h

    def gauss_ref(vec):
        loc = vec[:, :x_dim]
        st = jnp.exp(vec[:, x_dim])[:, None, None] * jnp.eye(x_dim)[None]
        return loc, st

    def logloss_ref(xv, loc, st):
        cov = st @ jnp.swapaxes(st, -1, -2)
        inv = jnp.linalg.inv(cov)
        d = xv - loc
        return jnp.sum(jnp.einsum("bi,bij,bj->b", d, inv, d))

    hb_r = mlp_ref(ha0, dan.b.loc)
    vec_a_r = mlp_ref(ha0, dan.c.loc)
    vec_b_r = mlp_ref(hb_r, dan.c.loc)
    ha_r = jnp.concatenate([mlp_ref(hb_r, dan.a.loc),
                            mlp_ref(y, dan.a.loc)], axis=0)
    la, sa = gauss_ref(vec_a_r)
    lb, sb = gauss_ref(vec_b_r)
    loss_r = logloss_ref(x, la, sa) + logloss_ref(x, lb, sb)

    assert ha_new.shape == (2 * mb, h_dim), ha_new.shape
    assert bool(jnp.allclose(hb_pallas, hb_r, atol=5e-3, rtol=5e-3)), \
        "hb mismatch vs reference"
    assert bool(jnp.allclose(ha_new, ha_r, atol=5e-3, rtol=5e-3)), \
        "ha mismatch vs reference"
    assert bool(jnp.allclose(loss, loss_r, atol=5e-2, rtol=1e-2)), \
        "loss mismatch vs reference"
    print("KERNEL_OK")
</pallas_src>

<mosaic_0001>
module attributes {stable_mosaic.version = 11 : i64} {
  func.func @_dan_fused_kernel(%arg0: i32, %arg1: memref<8x8xf32, #tpu.memory_space<vmem>>, %arg2: memref<8x8xf32, #tpu.memory_space<vmem>>, %arg3: memref<8x128xbf16, #tpu.memory_space<vmem>>, %arg4: memref<1x128xf32, #tpu.memory_space<vmem>>, %arg5: memref<128x128xbf16, #tpu.memory_space<vmem>>, %arg6: memref<1x128xf32, #tpu.memory_space<vmem>>, %arg7: memref<128x128xbf16, #tpu.memory_space<vmem>>, %arg8: memref<1x128xf32, #tpu.memory_space<vmem>>, %arg9: memref<8x128xbf16, #tpu.memory_space<vmem>>, %arg10: memref<1x128xf32, #tpu.memory_space<vmem>>, %arg11: memref<128x128xbf16, #tpu.memory_space<vmem>>, %arg12: memref<1x128xf32, #tpu.memory_space<vmem>>, %arg13: memref<8x128xbf16, #tpu.memory_space<vmem>>, %arg14: memref<1x128xf32, #tpu.memory_space<vmem>>, %arg15: memref<128x128xbf16, #tpu.memory_space<vmem>>, %arg16: memref<1x128xf32, #tpu.memory_space<vmem>>, %arg17: memref<128x128xbf16, #tpu.memory_space<vmem>>, %arg18: memref<1x128xf32, #tpu.memory_space<vmem>>, %arg19: memref<2x8x8xf32, #tpu.memory_space<vmem>>, %arg20: memref<2x8x5xf32, #tpu.memory_space<vmem>>) attributes {dimension_semantics = [#tpu.dimension_semantics<parallel>], iteration_bounds = array<i64: 2>, scalar_prefetch = 0 : i64, scratch_operands = 0 : i64, tpu.core_type = #tpu.core_type<tc>, window_params = [{transform_indices = @transform_0, window_bounds = array<i64: 8, 8>}, {transform_indices = @transform_1, window_bounds = array<i64: 8, 8>}, {pipeline_mode = #tpu.pipeline_mode<synchronous>, transform_indices = @transform_2, window_bounds = array<i64: 8, 128>}, {pipeline_mode = #tpu.pipeline_mode<synchronous>, transform_indices = @transform_3, window_bounds = array<i64: 1, 128>}, {pipeline_mode = #tpu.pipeline_mode<synchronous>, transform_indices = @transform_4, window_bounds = array<i64: 128, 128>}, {pipeline_mode = #tpu.pipeline_mode<synchronous>, transform_indices = @transform_5, window_bounds = array<i64: 1, 128>}, {pipeline_mode = #tpu.pipeline_mode<synchronous>, transform_indices = @transform_6, window_bounds = array<i64: 128, 128>}, {pipeline_mode = #tpu.pipeline_mode<synchronous>, transform_indices = @transform_7, window_bounds = array<i64: 1, 128>}, {pipeline_mode = #tpu.pipeline_mode<synchronous>, transform_indices = @transform_8, window_bounds = array<i64: 8, 128>}, {pipeline_mode = #tpu.pipeline_mode<synchronous>, transform_indices = @transform_9, window_bounds = array<i64: 1, 128>}, {pipeline_mode = #tpu.pipeline_mode<synchronous>, transform_indices = @transform_10, window_bounds = array<i64: 128, 128>}, {pipeline_mode = #tpu.pipeline_mode<synchronous>, transform_indices = @transform_11, window_bounds = array<i64: 1, 128>}, {pipeline_mode = #tpu.pipeline_mode<synchronous>, transform_indices = @transform_12, window_bounds = array<i64: 8, 128>}, {pipeline_mode = #tpu.pipeline_mode<synchronous>, transform_indices = @transform_13, window_bounds = array<i64: 1, 128>}, {pipeline_mode = #tpu.pipeline_mode<synchronous>, transform_indices = @transform_14, window_bounds = array<i64: 128, 128>}, {pipeline_mode = #tpu.pipeline_mode<synchronous>, transform_indices = @transform_15, window_bounds = array<i64: 1, 128>}, {pipeline_mode = #tpu.pipeline_mode<synchronous>, transform_indices = @transform_16, window_bounds = array<i64: 128, 128>}, {pipeline_mode = #tpu.pipeline_mode<synchronous>, transform_indices = @transform_17, window_bounds = array<i64: 1, 128>}, {transform_indices = @transform_18, window_bounds = array<i64: 2, 8, 8>}, {transform_indices = @transform_19, window_bounds = array<i64: 2, 8, 5>}]} {
    %c0 = arith.constant 0 : index
    %c0_0 = arith.constant 0 : index
    %0 = vector.load %arg1[%c0, %c0_0] : memref<8x8xf32, #tpu.memory_space<vmem>>, vector<8x8xf32>
    %c0_1 = arith.constant 0 : index
    %c0_2 = arith.constant 0 : index
    %1 = vector.load %arg2[%c0_1, %c0_2] : memref<8x8xf32, #tpu.memory_space<vmem>>, vector<8x8xf32>
    %c0_3 = arith.constant 0 : index
    %c0_4 = arith.constant 0 : index
    %2 = vector.load %arg3[%c0_3, %c0_4] : memref<8x128xbf16, #tpu.memory_space<vmem>>, vector<8x128xbf16>
    %c0_5 = arith.constant 0 : index
    %c0_6 = arith.constant 0 : index
    %3 = vector.load %arg4[%c0_5, %c0_6] : memref<1x128xf32, #tpu.memory_space<vmem>>, vector<1x128xf32>
    %4 = arith.truncf %0 : vector<8x8xf32> to vector<8x8xbf16>
    %cst = arith.constant dense<0.000000e+00> : vector<8x128xf32>
    %5 = tpu.matmul %4, %2, %cst {dimension_numbers = #tpu.dot_dimension_numbers<[1], [0], [0], [1], [0, 0, 1, 1], [], []>} : vector<8x8xbf16>, vector<8x128xbf16>, vector<8x128xf32> -> vector<8x128xf32>
    %6 = vector.broadcast %3 : vector<1x128xf32> to vector<8x128xf32>
    %7 = arith.addf %5, %6 : vector<8x128xf32>
    %cst_7 = arith.constant 0.000000e+00 : f32
    %8 = vector.broadcast %cst_7 : f32 to vector<8x128xf32>
    %9 = arith.maximumf %7, %8 : vector<8x128xf32>
    %c0_8 = arith.constant 0 : index
    %c0_9 = arith.constant 0 : index
    %10 = vector.load %arg5[%c0_8, %c0_9] : memref<128x128xbf16, #tpu.memory_space<vmem>>, vector<128x128xbf16>
    %c0_10 = arith.constant 0 : index
    %c0_11 = arith.constant 0 : index
    %11 = vector.load %arg6[%c0_10, %c0_11] : memref<1x128xf32, #tpu.memory_space<vmem>>, vector<1x128xf32>
    %12 = arith.truncf %9 : vector<8x128xf32> to vector<8x128xbf16>
    %cst_12 = arith.constant dense<0.000000e+00> : vector<8x128xf32>
    %13 = tpu.matmul %12, %10, %cst_12 {dimension_numbers = #tpu.dot_dimension_numbers<[1], [0], [0], [1], [0, 0, 1, 1], [], []>} : vector<8x128xbf16>, vector<128x128xbf16>, vector<8x128xf32> -> vector<8x128xf32>
    %14 = vector.broadcast %11 : vector<1x128xf32> to vector<8x128xf32>
    %15 = arith.addf %13, %14 : vector<8x128xf32>
    %cst_13 = arith.constant 0.000000e+00 : f32
    %16 = vector.broadcast %cst_13 : f32 to vector<8x128xf32>
    %17 = arith.maximumf %15, %16 : vector<8x128xf32>
    %c0_14 = arith.constant 0 : index
    %c0_15 = arith.constant 0 : index
    %18 = vector.load %arg7[%c0_14, %c0_15] : memref<128x128xbf16, #tpu.memory_space<vmem>>, vector<128x128xbf16>
    %c0_16 = arith.constant 0 : index
    %c0_17 = arith.constant 0 : index
    %19 = vector.load %arg8[%c0_16, %c0_17] : memref<1x128xf32, #tpu.memory_space<vmem>>, vector<1x128xf32>
    %20 = arith.truncf %17 : vector<8x128xf32> to vector<8x128xbf16>
    %cst_18 = arith.constant dense<0.000000e+00> : vector<8x128xf32>
    %21 = tpu.matmul %20, %18, %cst_18 {dimension_numbers = #tpu.dot_dimension_numbers<[1], [0], [0], [1], [0, 0, 1, 1], [], []>} : vector<8x128xbf16>, vector<128x128xbf16>, vector<8x128xf32> -> vector<8x128xf32>
    %22 = vector.broadcast %19 : vector<1x128xf32> to vector<8x128xf32>
    %23 = arith.addf %21, %22 : vector<8x128xf32>
    %24 = vector.extract_strided_slice %23 {offsets = [0, 0], sizes = [8, 8], strides = [1, 1]} : vector<8x128xf32> to vector<8x8xf32>
    %c0_19 = arith.constant 0 : index
    %c0_20 = arith.constant 0 : index
    %25 = vector.load %arg9[%c0_19, %c0_20] : memref<8x128xbf16, #tpu.memory_space<vmem>>, vector<8x128xbf16>
    %c0_21 = arith.constant 0 : index
    %c0_22 = arith.constant 0 : index
    %26 = vector.load %arg10[%c0_21, %c0_22] : memref<1x128xf32, #tpu.memory_space<vmem>>, vector<1x128xf32>
    %27 = arith.truncf %0 : vector<8x8xf32> to vector<8x8xbf16>
    %cst_23 = arith.constant dense<0.000000e+00> : vector<8x128xf32>
    %28 = tpu.matmul %27, %25, %cst_23 {dimension_numbers = #tpu.dot_dimension_numbers<[1], [0], [0], [1], [0, 0, 1, 1], [], []>} : vector<8x8xbf16>, vector<8x128xbf16>, vector<8x128xf32> -> vector<8x128xf32>
    %29 = vector.broadcast %26 : vector<1x128xf32> to vector<8x128xf32>
    %30 = arith.addf %28, %29 : vector<8x128xf32>
    %cst_24 = arith.constant 0.000000e+00 : f32
    %31 = vector.broadcast %cst_24 : f32 to vector<8x128xf32>
    %32 = arith.maximumf %30, %31 : vector<8x128xf32>
    %c0_25 = arith.constant 0 : index
    %c0_26 = arith.constant 0 : index
    %33 = vector.load %arg11[%c0_25, %c0_26] : memref<128x128xbf16, #tpu.memory_space<vmem>>, vector<128x128xbf16>
    %c0_27 = arith.constant 0 : index
    %c0_28 = arith.constant 0 : index
    %34 = vector.load %arg12[%c0_27, %c0_28] : memref<1x128xf32, #tpu.memory_space<vmem>>, vector<1x128xf32>
    %35 = arith.truncf %32 : vector<8x128xf32> to vector<8x128xbf16>
    %cst_29 = arith.constant dense<0.000000e+00> : vector<8x128xf32>
    %36 = tpu.matmul %35, %33, %cst_29 {dimension_numbers = #tpu.dot_dimension_numbers<[1], [0], [0], [1], [0, 0, 1, 1], [], []>} : vector<8x128xbf16>, vector<128x128xbf16>, vector<8x128xf32> -> vector<8x128xf32>
    %37 = vector.broadcast %34 : vector<1x128xf32> to vector<8x128xf32>
    %38 = arith.addf %36, %37 : vector<8x128xf32>
    %c0_30 = arith.constant 0 : index
    %c0_31 = arith.constant 0 : index
    %39 = vector.load %arg9[%c0_30, %c0_31] : memref<8x128xbf16, #tpu.memory_space<vmem>>, vector<8x128xbf16>
    %c0_32 = arith.constant 0 : index
    %c0_33 = arith.constant 0 : index
    %40 = vector.load %arg10[%c0_32, %c0_33] : memref<1x128xf32, #tpu.memory_space<vmem>>, vector<1x128xf32>
    %41 = arith.truncf %24 : vector<8x8xf32> to vector<8x8xbf16>
    %cst_34 = arith.constant dense<0.000000e+00> : vector<8x128xf32>
    %42 = tpu.matmul %41, %39, %cst_34 {dimension_numbers = #tpu.dot_dimension_numbers<[1], [0], [0], [1], [0, 0, 1, 1], [], []>} : vector<8x8xbf16>, vector<8x128xbf16>, vector<8x128xf32> -> vector<8x128xf32>
    %43 = vector.broadcast %40 : vector<1x128xf32> to vector<8x128xf32>
    %44 = arith.addf %42, %43 : vector<8x128xf32>
    %cst_35 = arith.constant 0.000000e+00 : f32
    %45 = vector.broadcast %cst_35 : f32 to vector<8x128xf32>
    %46 = arith.maximumf %44, %45 : vector<8x128xf32>
    %c0_36 = arith.constant 0 : index
    %c0_37 = arith.constant 0 : index
    %47 = vector.load %arg11[%c0_36, %c0_37] : memref<128x128xbf16, #tpu.memory_space<vmem>>, vector<128x128xbf16>
    %c0_38 = arith.constant 0 : index
    %c0_39 = arith.constant 0 : index
    %48 = vector.load %arg12[%c0_38, %c0_39] : memref<1x128xf32, #tpu.memory_space<vmem>>, vector<1x128xf32>
    %49 = arith.truncf %46 : vector<8x128xf32> to vector<8x128xbf16>
    %cst_40 = arith.constant dense<0.000000e+00> : vector<8x128xf32>
    %50 = tpu.matmul %49, %47, %cst_40 {dimension_numbers = #tpu.dot_dimension_numbers<[1], [0], [0], [1], [0, 0, 1, 1], [], []>} : vector<8x128xbf16>, vector<128x128xbf16>, vector<8x128xf32> -> vector<8x128xf32>
    %51 = vector.broadcast %48 : vector<1x128xf32> to vector<8x128xf32>
    %52 = arith.addf %50, %51 : vector<8x128xf32>
    %c0_41 = arith.constant 0 : index
    %c0_42 = arith.constant 0 : index
    %53 = vector.load %arg13[%c0_41, %c0_42] : memref<8x128xbf16, #tpu.memory_space<vmem>>, vector<8x128xbf16>
    %c0_43 = arith.constant 0 : index
    %c0_44 = arith.constant 0 : index
    %54 = vector.load %arg14[%c0_43, %c0_44] : memref<1x128xf32, #tpu.memory_space<vmem>>, vector<1x128xf32>
    %55 = arith.truncf %24 : vector<8x8xf32> to vector<8x8xbf16>
    %cst_45 = arith.constant dense<0.000000e+00> : vector<8x128xf32>
    %56 = tpu.matmul %55, %53, %cst_45 {dimension_numbers = #tpu.dot_dimension_numbers<[1], [0], [0], [1], [0, 0, 1, 1], [], []>} : vector<8x8xbf16>, vector<8x128xbf16>, vector<8x128xf32> -> vector<8x128xf32>
    %57 = vector.broadcast %54 : vector<1x128xf32> to vector<8x128xf32>
    %58 = arith.addf %56, %57 : vector<8x128xf32>
    %cst_46 = arith.constant 0.000000e+00 : f32
    %59 = vector.broadcast %cst_46 : f32 to vector<8x128xf32>
    %60 = arith.maximumf %58, %59 : vector<8x128xf32>
    %c0_47 = arith.constant 0 : index
    %c0_48 = arith.constant 0 : index
    %61 = vector.load %arg15[%c0_47, %c0_48] : memref<128x128xbf16, #tpu.memory_space<vmem>>, vector<128x128xbf16>
    %c0_49 = arith.constant 0 : index
    %c0_50 = arith.constant 0 : index
    %62 = vector.load %arg16[%c0_49, %c0_50] : memref<1x128xf32, #tpu.memory_space<vmem>>, vector<1x128xf32>
    %63 = arith.truncf %60 : vector<8x128xf32> to vector<8x128xbf16>
    %cst_51 = arith.constant dense<0.000000e+00> : vector<8x128xf32>
    %64 = tpu.matmul %63, %61, %cst_51 {dimension_numbers = #tpu.dot_dimension_numbers<[1], [0], [0], [1], [0, 0, 1, 1], [], []>} : vector<8x128xbf16>, vector<128x128xbf16>, vector<8x128xf32> -> vector<8x128xf32>
    %65 = vector.broadcast %62 : vector<1x128xf32> to vector<8x128xf32>
    %66 = arith.addf %64, %65 : vector<8x128xf32>
    %cst_52 = arith.constant 0.000000e+00 : f32
    %67 = vector.broadcast %cst_52 : f32 to vector<8x128xf32>
    %68 = arith.maximumf %66, %67 : vector<8x128xf32>
    %c0_53 = arith.constant 0 : index
    %c0_54 = arith.constant 0 : index
    %69 = vector.load %arg17[%c0_53, %c0_54] : memref<128x128xbf16, #tpu.memory_space<vmem>>, vector<128x128xbf16>
    %c0_55 = arith.constant 0 : index
    %c0_56 = arith.constant 0 : index
    %70 = vector.load %arg18[%c0_55, %c0_56] : memref<1x128xf32, #tpu.memory_space<vmem>>, vector<1x128xf32>
    %71 = arith.truncf %68 : vector<8x128xf32> to vector<8x128xbf16>
    %cst_57 = arith.constant dense<0.000000e+00> : vector<8x128xf32>
    %72 = tpu.matmul %71, %69, %cst_57 {dimension_numbers = #tpu.dot_dimension_numbers<[1], [0], [0], [1], [0, 0, 1, 1], [], []>} : vector<8x128xbf16>, vector<128x128xbf16>, vector<8x128xf32> -> vector<8x128xf32>
    %73 = vector.broadcast %70 : vector<1x128xf32> to vector<8x128xf32>
    %74 = arith.addf %72, %73 : vector<8x128xf32>
    %c0_58 = arith.constant 0 : index
    %c0_59 = arith.constant 0 : index
    %75 = vector.load %arg13[%c0_58, %c0_59] : memref<8x128xbf16, #tpu.memory_space<vmem>>, vector<8x128xbf16>
    %c0_60 = arith.constant 0 : index
    %c0_61 = arith.constant 0 : index
    %76 = vector.load %arg14[%c0_60, %c0_61] : memref<1x128xf32, #tpu.memory_space<vmem>>, vector<1x128xf32>
    %77 = arith.truncf %1 : vector<8x8xf32> to vector<8x8xbf16>
    %cst_62 = arith.constant dense<0.000000e+00> : vector<8x128xf32>
    %78 = tpu.matmul %77, %75, %cst_62 {dimension_numbers = #tpu.dot_dimension_numbers<[1], [0], [0], [1], [0, 0, 1, 1], [], []>} : vector<8x8xbf16>, vector<8x128xbf16>, vector<8x128xf32> -> vector<8x128xf32>
    %79 = vector.broadcast %76 : vector<1x128xf32> to vector<8x128xf32>
    %80 = arith.addf %78, %79 : vector<8x128xf32>
    %cst_63 = arith.constant 0.000000e+00 : f32
    %81 = vector.broadcast %cst_63 : f32 to vector<8x128xf32>
    %82 = arith.maximumf %80, %81 : vector<8x128xf32>
    %c0_64 = arith.constant 0 : index
    %c0_65 = arith.constant 0 : index
    %83 = vector.load %arg15[%c0_64, %c0_65] : memref<128x128xbf16, #tpu.memory_space<vmem>>, vector<128x128xbf16>
    %c0_66 = arith.constant 0 : index
    %c0_67 = arith.constant 0 : index
    %84 = vector.load %arg16[%c0_66, %c0_67] : memref<1x128xf32, #tpu.memory_space<vmem>>, vector<1x128xf32>
    %85 = arith.truncf %82 : vector<8x128xf32> to vector<8x128xbf16>
    %cst_68 = arith.constant dense<0.000000e+00> : vector<8x128xf32>
    %86 = tpu.matmul %85, %83, %cst_68 {dimension_numbers = #tpu.dot_dimension_numbers<[1], [0], [0], [1], [0, 0, 1, 1], [], []>} : vector<8x128xbf16>, vector<128x128xbf16>, vector<8x128xf32> -> vector<8x128xf32>
    %87 = vector.broadcast %84 : vector<1x128xf32> to vector<8x128xf32>
    %88 = arith.addf %86, %87 : vector<8x128xf32>
    %cst_69 = arith.constant 0.000000e+00 : f32
    %89 = vector.broadcast %cst_69 : f32 to vector<8x128xf32>
    %90 = arith.maximumf %88, %89 : vector<8x128xf32>
    %c0_70 = arith.constant 0 : index
    %c0_71 = arith.constant 0 : index
    %91 = vector.load %arg17[%c0_70, %c0_71] : memref<128x128xbf16, #tpu.memory_space<vmem>>, vector<128x128xbf16>
    %c0_72 = arith.constant 0 : index
    %c0_73 = arith.constant 0 : index
    %92 = vector.load %arg18[%c0_72, %c0_73] : memref<1x128xf32, #tpu.memory_space<vmem>>, vector<1x128xf32>
    %93 = arith.truncf %90 : vector<8x128xf32> to vector<8x128xbf16>
    %cst_74 = arith.constant dense<0.000000e+00> : vector<8x128xf32>
    %94 = tpu.matmul %93, %91, %cst_74 {dimension_numbers = #tpu.dot_dimension_numbers<[1], [0], [0], [1], [0, 0, 1, 1], [], []>} : vector<8x128xbf16>, vector<128x128xbf16>, vector<8x128xf32> -> vector<8x128xf32>
    %95 = vector.broadcast %92 : vector<1x128xf32> to vector<8x128xf32>
    %96 = arith.addf %94, %95 : vector<8x128xf32>
    %97 = vector.extract_strided_slice %74 {offsets = [0, 0], sizes = [8, 8], strides = [1, 1]} : vector<8x128xf32> to vector<8x8xf32>
    %c0_75 = arith.constant 0 : index
    %c0_76 = arith.constant 0 : index
    %c0_77 = arith.constant 0 : index
    %98 = vector.load %arg19[%c0_75, %c0_76, %c0_77] : memref<2x8x8xf32, #tpu.memory_space<vmem>>, vector<1x8x8xf32>
    %99 = vector.shape_cast %98 : vector<1x8x8xf32> to vector<8x8xf32>
    %100 = vector.shape_cast %97 : vector<8x8xf32> to vector<1x8x8xf32>
    tpu.vector_store %arg19[%c0_75, %c0_76, %c0_77], %100 {strides = array<i32>} : memref<2x8x8xf32, #tpu.memory_space<vmem>>, vector<1x8x8xf32>,
    %101 = vector.extract_strided_slice %96 {offsets = [0, 0], sizes = [8, 8], strides = [1, 1]} : vector<8x128xf32> to vector<8x8xf32>
    %c1 = arith.constant 1 : index
    %c0_78 = arith.constant 0 : index
    %c0_79 = arith.constant 0 : index
    %102 = vector.load %arg19[%c1, %c0_78, %c0_79] : memref<2x8x8xf32, #tpu.memory_space<vmem>>, vector<1x8x8xf32>
    %103 = vector.shape_cast %102 : vector<1x8x8xf32> to vector<8x8xf32>
    %104 = vector.shape_cast %101 : vector<8x8xf32> to vector<1x8x8xf32>
    tpu.vector_store %arg19[%c1, %c0_78, %c0_79], %104 {strides = array<i32>} : memref<2x8x8xf32, #tpu.memory_space<vmem>>, vector<1x8x8xf32>,
    %105 = vector.extract_strided_slice %38 {offsets = [0, 0], sizes = [8, 5], strides = [1, 1]} : vector<8x128xf32> to vector<8x5xf32>
    %c0_80 = arith.constant 0 : index
    %c0_81 = arith.constant 0 : index
    %c0_82 = arith.constant 0 : index
    %106 = vector.load %arg20[%c0_80, %c0_81, %c0_82] : memref<2x8x5xf32, #tpu.memory_space<vmem>>, vector<1x8x5xf32>
    %107 = vector.shape_cast %106 : vector<1x8x5xf32> to vector<8x5xf32>
    %108 = vector.shape_cast %105 : vector<8x5xf32> to vector<1x8x5xf32>
    tpu.vector_store %arg20[%c0_80, %c0_81, %c0_82], %108 {strides = array<i32>} : memref<2x8x5xf32, #tpu.memory_space<vmem>>, vector<1x8x5xf32>,
    %109 = vector.extract_strided_slice %52 {offsets = [0, 0], sizes = [8, 5], strides = [1, 1]} : vector<8x128xf32> to vector<8x5xf32>
    %c1_83 = arith.constant 1 : index
    %c0_84 = arith.constant 0 : index
    %c0_85 = arith.constant 0 : index
    %110 = vector.load %arg20[%c1_83, %c0_84, %c0_85] : memref<2x8x5xf32, #tpu.memory_space<vmem>>, vector<1x8x5xf32>
    %111 = vector.shape_cast %110 : vector<1x8x5xf32> to vector<8x5xf32>
    %112 = vector.shape_cast %109 : vector<8x5xf32> to vector<1x8x5xf32>
    tpu.vector_store %arg20[%c1_83, %c0_84, %c0_85], %112 {strides = array<i32>} : memref<2x8x5xf32, #tpu.memory_space<vmem>>, vector<1x8x5xf32>,
    return
  }
  func.func @transform_0(%arg0: i32) -> (i32, i32) {
    %c0_i32 = arith.constant 0 : i32
    %c0_i32_0 = arith.constant 0 : i32
    return %arg0, %c0_i32 : i32, i32
  }
  func.func @transform_1(%arg0: i32) -> (i32, i32) {
    %c0_i32 = arith.constant 0 : i32
    %c0_i32_0 = arith.constant 0 : i32
    return %arg0, %c0_i32 : i32, i32
  }
  func.func @transform_2(%arg0: i32) -> (i32, i32) {
    %c0_i32 = arith.constant 0 : i32
    %c0_i32_0 = arith.constant 0 : i32
    %c0_i32_1 = arith.constant 0 : i32
    return %c0_i32, %c0_i32_0 : i32, i32
  }
  func.func @transform_3(%arg0: i32) -> (i32, i32) {
    %c0_i32 = arith.constant 0 : i32
    %c0_i32_0 = arith.constant 0 : i32
    %c0_i32_1 = arith.constant 0 : i32
    return %c0_i32, %c0_i32_0 : i32, i32
  }
  func.func @transform_4(%arg0: i32) -> (i32, i32) {
    %c0_i32 = arith.constant 0 : i32
    %c0_i32_0 = arith.constant 0 : i32
    %c0_i32_1 = arith.constant 0 : i32
    return %c0_i32, %c0_i32_0 : i32, i32
  }
  func.func @transform_5(%arg0: i32) -> (i32, i32) {
    %c0_i32 = arith.constant 0 : i32
    %c0_i32_0 = arith.constant 0 : i32
    %c0_i32_1 = arith.constant 0 : i32
    return %c0_i32, %c0_i32_0 : i32, i32
  }
  func.func @transform_6(%arg0: i32) -> (i32, i32) {
    %c0_i32 = arith.constant 0 : i32
    %c0_i32_0 = arith.constant 0 : i32
    %c0_i32_1 = arith.constant 0 : i32
    return %c0_i32, %c0_i32_0 : i32, i32
  }
  func.func @transform_7(%arg0: i32) -> (i32, i32) {
    %c0_i32 = arith.constant 0 : i32
    %c0_i32_0 = arith.constant 0 : i32
    %c0_i32_1 = arith.constant 0 : i32
    return %c0_i32, %c0_i32_0 : i32, i32
  }
  func.func @transform_8(%arg0: i32) -> (i32, i32) {
    %c0_i32 = arith.constant 0 : i32
    %c0_i32_0 = arith.constant 0 : i32
    %c0_i32_1 = arith.constant 0 : i32
    return %c0_i32, %c0_i32_0 : i32, i32
  }
  func.func @transform_9(%arg0: i32) -> (i32, i32) {
    %c0_i32 = arith.constant 0 : i32
    %c0_i32_0 = arith.constant 0 : i32
    %c0_i32_1 = arith.constant 0 : i32
    return %c0_i32, %c0_i32_0 : i32, i32
  }
  func.func @transform_10(%arg0: i32) -> (i32, i32) {
    %c0_i32 = arith.constant 0 : i32
    %c0_i32_0 = arith.constant 0 : i32
    %c0_i32_1 = arith.constant 0 : i32
    return %c0_i32, %c0_i32_0 : i32, i32
  }
  func.func @transform_11(%arg0: i32) -> (i32, i32) {
    %c0_i32 = arith.constant 0 : i32
    %c0_i32_0 = arith.constant 0 : i32
    %c0_i32_1 = arith.constant 0 : i32
    return %c0_i32, %c0_i32_0 : i32, i32
  }
  func.func @transform_12(%arg0: i32) -> (i32, i32) {
    %c0_i32 = arith.constant 0 : i32
    %c0_i32_0 = arith.constant 0 : i32
    %c0_i32_1 = arith.constant 0 : i32
    return %c0_i32, %c0_i32_0 : i32, i32
  }
  func.func @transform_13(%arg0: i32) -> (i32, i32) {
    %c0_i32 = arith.constant 0 : i32
    %c0_i32_0 = arith.constant 0 : i32
    %c0_i32_1 = arith.constant 0 : i32
    return %c0_i32, %c0_i32_0 : i32, i32
  }
  func.func @transform_14(%arg0: i32) -> (i32, i32) {
    %c0_i32 = arith.constant 0 : i32
    %c0_i32_0 = arith.constant 0 : i32
    %c0_i32_1 = arith.constant 0 : i32
    return %c0_i32, %c0_i32_0 : i32, i32
  }
  func.func @transform_15(%arg0: i32) -> (i32, i32) {
    %c0_i32 = arith.constant 0 : i32
    %c0_i32_0 = arith.constant 0 : i32
    %c0_i32_1 = arith.constant 0 : i32
    return %c0_i32, %c0_i32_0 : i32, i32
  }
  func.func @transform_16(%arg0: i32) -> (i32, i32) {
    %c0_i32 = arith.constant 0 : i32
    %c0_i32_0 = arith.constant 0 : i32
    %c0_i32_1 = arith.constant 0 : i32
    return %c0_i32, %c0_i32_0 : i32, i32
  }
  func.func @transform_17(%arg0: i32) -> (i32, i32) {
    %c0_i32 = arith.constant 0 : i32
    %c0_i32_0 = arith.constant 0 : i32
    %c0_i32_1 = arith.constant 0 : i32
    return %c0_i32, %c0_i32_0 : i32, i32
  }
  func.func @transform_18(%arg0: i32) -> (i32, i32, i32) {
    %c0_i32 = arith.constant 0 : i32
    %c0_i32_0 = arith.constant 0 : i32
    %c0_i32_1 = arith.constant 0 : i32
    return %c0_i32, %arg0, %c0_i32_0 : i32, i32, i32
  }
  func.func @transform_19(%arg0: i32) -> (i32, i32, i32) {
    %c0_i32 = arith.constant 0 : i32
    %c0_i32_0 = arith.constant 0 : i32
    %c0_i32_1 = arith.constant 0 : i32
    return %c0_i32, %arg0, %c0_i32_0 : i32, i32, i32
  }
}

</mosaic_0001>

<bundles_post_ra>
// kernel: tpu_custom_call.1
= control target key start
LH: loop header
LB: loop body
LE: loop exit
PB: predicated region body
PF: predicated region fallthrough
CT: control target
= control target key end

     0   :  { %s3054_s0 = inlined_call_operand.vmem [shape: f32[16,8], index: 0, kind: input, shape index: {}]   ;;  %s3055_s1 = inlined_call_operand.vmem [shape: f32[16,8], index: 1, kind: input, shape index: {}]   ;;  %s3056_s2 = inlined_call_operand.vmem [shape: bf16[8,128], index: 2, kind: input, shape index: {}]   ;;  %s3057_s3 = inlined_call_operand.vmem [shape: f32[1,128], index: 3, kind: input, shape index: {}]   ;;  %s3058_s4 = inlined_call_operand.hbm [shape: bf16[128,128], index: 4, kind: input, shape index: {}]   ;;  %s3059_s5 = inlined_call_operand.vmem [shape: f32[1,128], index: 5, kind: input, shape index: {}]   ;;  %s3060_s6 = inlined_call_operand.vmem [shape: bf16[128,128], index: 6, kind: input, shape index: {}]   ;;  %s3061_s7 = inlined_call_operand.hbm [shape: f32[1,128], index: 7, kind: input, shape index: {}]   ;;  %s3062_s8 = inlined_call_operand.vmem [shape: bf16[8,128], index: 8, kind: input, shape index: {}]   ;;  %s3063_s9 = inlined_call_operand.vmem [shape: f32[1,128], index: 9, kind: input, shape index: {}]   ;;  %s3064_s10 = inlined_call_operand.hbm [shape: bf16[128,128], index: 10, kind: input, shape index: {}]   ;;  %s3065_s11 = inlined_call_operand.vmem [shape: f32[1,128], index: 11, kind: input, shape index: {}]   ;;  %s3066_s12 = inlined_call_operand.vmem [shape: bf16[8,128], index: 12, kind: input, shape index: {}]   ;;  %s3067_s13 = inlined_call_operand.vmem [shape: f32[1,128], index: 13, kind: input, shape index: {}]   ;;  %s3068_s14 = inlined_call_operand.hbm [shape: bf16[128,128], index: 14, kind: input, shape index: {}]   ;;  %s3069_s15 = inlined_call_operand.vmem [shape: f32[1,128], index: 15, kind: input, shape index: {}]   ;;  %s3070_s16 = inlined_call_operand.hbm [shape: bf16[128,128], index: 16, kind: input, shape index: {}]   ;;  %s3071_s17 = inlined_call_operand.vmem [shape: f32[1,128], index: 17, kind: input, shape index: {}]   ;;  %s3072_s18 = inlined_call_operand.vmem [shape: f32[2,16,8], index: 18, kind: output, shape index: {0}]   ;;  %s3073_s19 = inlined_call_operand.vmem [shape: f32[2,16,5], index: 19, kind: output, shape index: {1}]  }
   0x1   :  { %3080 = sst [smem:[#allocation19_spill]] %s3054_s0 }
   0x2   :  { %3081 = sst [smem:[#allocation20_spill]] %s3055_s1 }
   0x3   :  { %3082 = sst [smem:[#allocation21_spill]] %s3056_s2 }
   0x4   :  { %3083 = sst [smem:[#allocation22_spill]] %s3057_s3 }
   0x5   :  { %3084 = sst [smem:[#allocation23_spill]] %s3061_s7 }
   0x6   :  { %3085 = sst [smem:[#allocation24_spill]] %s3068_s14 }
   0x7   :  { %3086 = sst [smem:[#allocation25_spill]] %s3071_s17 }
   0x8   :  { %3087 = sst [smem:[#allocation26_spill]] %s3072_s18 }
   0x9   :  { %3088 = sst [smem:[#allocation27_spill]] %s3073_s19 }
   0xa   :  { %25 = vsyncpa [#allocation3], 0 }
   0xb   :  { %26 = vsyncpa [#allocation5], 0 }
   0xc   :  { %27 = vsyncpa [#allocation8], 0  ;;  %s2623_s0 = smov 0   ;;  %s2625_s30 = smov 0  }
   0xd   :  { %s2627_s20 = smov 0  }
   0xe LB: > { %3089 = sst [smem:[#allocation15_spill]] %s2508_s30  ;;  %s2636_s21 = sadd.s32 4294967295, %s2512_s20   ;;  %s2512_s20 = sphi %s2627_s20, %s3117_s20   ;;  %s2508_s30 = sphi %s2625_s30, %s3119_s30   ;;  %s2504_s0 = sphi %s2623_s0, %s3118_s0  }
   0xf   : > { %s2638_s1 = sadd.s32 1, %s2512_s20   ;;  %s428_s2 = sadd.s32 1, %s2508_s30 }
  0x10   : > { %3090 = sst [smem:[#allocation16_spill]] %s2638_s1  ;;  %s425_s22 = ssub.s32 %s2512_s20, %s2638_s1 }
  0x11   : > { %p426_p0 = scmp.eq.s32.totalorder %s425_s22, 0  ;;  %p438_p1 = scmp.ne.s32.totalorder %s2508_s30, %s2504_s0 }
  0x12   : > { %p439_p2 = scmp.eq.s32.totalorder %s2636_s21, 1  ;;  %p1869_p3 = scmp.ge.s32.totalorder %s2512_s20, 1 }
  0x13   : > { %s2646_s23 = scalar_select %p426_p0, %s2508_s30, %s428_s2  }
  0x14   : > { %p2648_p4 = por %p439_p2, %p438_p1  ;;  %p478_p5 = scmp.lt.s32.totalorder %s2512_s20, 3 }
  0x15   : > { %3091 = sst [smem:[#allocation17_spill]] %s2646_s23  ;;  %p3077_p6 = scmp.eq.s32.totalorder %s2636_s21, 0 }
  0x16   : > { %s3092_s24 = scalar_select %p2648_p4, 1, 0 }
  0x17   : > { %p2653_p7 = pnand %p1869_p3, %p478_p5  ;;  %s2514_s3 = smov [#allocation4]  }
  0x18   : > { %3093 = sst [smem:[#allocation18_spill]] %s3092_s24  ;;  %s516_s26 = sshll.u32 %s2514_s3, 4  ;;  %s517_s26 = int_to_ptr.vmem [resolvable:$true] %s516_s26 }
  0x19   : > { %s3094_s25 = scalar_select %p2653_p7, 1, 0 }
  0x1a   : > { %p2239_p8 = pneg %p2653_p7  ;;  %s2515_s28 = smov [#allocation7]  }
  0x1b   : > { %s554_s29 = sshll.u32 %s2515_s28, 4  ;;  %s2516_s20 = smov [#allocation2]   ;;  %s2665_s29 = int_to_ptr.vmem [resolvable:$true] %s554_s29 }
  0x1c   : > { %p2661_p9 = pnand %p3077_p6, %p2239_p8  ;;  %s2667_s22 = sshll.u32 %s2516_s20, 4  ;;  %s497_s22 = int_to_ptr.vmem [resolvable:$true] %s2667_s22 }
  0x1d   : > { %s3096_s7 = sld [smem:[#allocation23_spill]] }
  0x1e   : > { %p2677_p11 = pneg %p2661_p9 }
  0x23   : > { %s2338_s3 = scalar_lea.hbm %s3096_s7, 16 }
  0x24   : > { %p2339_p10 = scmp.ne.s32.totalorder %s3096_s7, %s2338_s3  ;;  %p2345_p0 = scmp.lt.u32.totalorder %s2338_s3, %s3096_s7 }
  0x26   : > { %p2341_p12 = pnand %p2677_p11, %p2339_p10 }
  0x28   : > { %p2342_p13 = pneg %p2341_p12 }
  0x2a   : > { %p2347_p1 = pnand %p2345_p0, %p2342_p13 }
  0x2c   : > { %2350 = shalt.err (!%p2347_p1)
}
  0x2d   : > { %s2351_s23 = scalar_lea.vmem %s517_s26, 16  ;;  %s2358_s30 = scalar_lea.vmem %s517_s26, 32 }
  0x2e   : > { %p2352_p2 = scmp.ne.s32.totalorder %s517_s26, %s2351_s23  ;;  %p2359_p8 = scmp.lt.s32.totalorder %s517_s26, %s517_s26 }
  0x2f   : > { %p2360_p6 = scmp.lt.s32.totalorder %s2358_s30, %s2351_s23 }
  0x30   : > { %p2354_p3 = pnand %p2352_p2, %p2677_p11 }
  0x31   : > { %p2361_p4 = por %p2360_p6, %p2359_p8 }
  0x32   : > { %p2355_p5 = pneg %p2354_p3 }
  0x34   : > { %p2362_p7 = pnand %p2361_p4, %p2355_p5 }
  0x36   : > { %2365 = shalt.err (!%p2362_p7)
}
  0x37   : > { %2245 = dma.hbm_to_vmem [thread:$0]  (!%p2661_p9), %s3096_s7, 16, %s517_s26, [#allocation5]  }
  0x38   : > { %s3098_s14 = sld [smem:[#allocation24_spill]] }
  0x3e   : > { %s2366_s20 = scalar_lea.hbm %s3098_s14, 1024 }
  0x3f   : > { %p2367_p10 = scmp.ne.s32.totalorder %s3098_s14, %s2366_s20  ;;  %p2373_p4 = scmp.lt.u32.totalorder %s2366_s20, %s3098_s14 }
  0x41   : > { %p2369_p12 = pnand %p2367_p10, %p2677_p11 }
  0x43   : > { %p2370_p6 = pneg %p2369_p12 }
  0x45   : > { %p2375_p7 = pnand %p2373_p4, %p2370_p6 }
  0x47   : > { %2378 = shalt.err (!%p2375_p7)
}
  0x48   : > { %s2379_s26 = scalar_lea.vmem %s2665_s29, 1024  ;;  %p2387_p2 = scmp.lt.s32.totalorder %s2665_s29, %s2665_s29 }
  0x49   : > { %p2380_p13 = scmp.ne.s32.totalorder %s2665_s29, %s2379_s26  ;;  %p2388_p3 = scmp.lt.s32.totalorder %s2379_s26, %s2379_s26 }
  0x4b   : > { %p2382_p0 = pnand %p2380_p13, %p2677_p11  ;;  %p2389_p5 = por %p2388_p3, %p2387_p2 }
  0x4d   : > { %p2383_p1 = pneg %p2382_p0 }
  0x4f   : > { %p2390_p8 = pnand %p2389_p5, %p2383_p1 }
  0x51   : > { %2393 = shalt.err (!%p2390_p8)
}
  0x52   : > { %s2517_s18 = smov 64   ;;  %s2518_s24 = smov 4  }
  0x53   : > { %2251 = dma.hbm_to_vmem [thread:$0]  (!%p2661_p9), %s3098_s14, 1024, %s2665_s29, [#allocation8], %s2517_s18, %s2517_s18, %s2518_s24  }
  0x54   : > { %s2394_s20 = scalar_lea.hbm %s3058_s4, 1024 }
  0x55   : > { %p2395_p10 = scmp.ne.s32.totalorder %s3058_s4, %s2394_s20  ;;  %p2401_p4 = scmp.lt.u32.totalorder %s2394_s20, %s3058_s4 }
  0x57   : > { %p2397_p12 = pnand %p2395_p10, %p2677_p11 }
  0x59   : > { %p2398_p6 = pneg %p2397_p12 }
  0x5b   : > { %p2403_p7 = pnand %p2401_p4, %p2398_p6 }
  0x5d   : > { %2406 = shalt.err (!%p2403_p7)
}
  0x5e   : > { %s2407_s1 = scalar_lea.vmem %s497_s22, 1024  ;;  %p2415_p2 = scmp.lt.s32.totalorder %s497_s22, %s497_s22 }
  0x5f   : > { %p2408_p13 = scmp.ne.s32.totalorder %s497_s22, %s2407_s1  ;;  %p2416_p3 = scmp.lt.s32.totalorder %s2407_s1, %s2407_s1 }
  0x61   : > { %p2410_p0 = pnand %p2408_p13, %p2677_p11  ;;  %p2417_p5 = por %p2416_p3, %p2415_p2 }
  0x63   : > { %p2411_p1 = pneg %p2410_p0 }
  0x65   : > { %p2418_p8 = pnand %p2417_p5, %p2411_p1 }
  0x67   : > { %2421 = shalt.err (!%p2418_p8)
}
  0x68   : > { %2242 = dma.hbm_to_vmem [thread:$0]  (!%p2661_p9), %s3058_s4, 1024, %s497_s22, [#allocation3], %s2517_s18, %s2517_s18, %s2518_s24  }
  0x69   : > { %s2519_s2 = smov [#allocation6]   ;;  %s2520_s28 = smov [#allocation9]  }
  0x6a   : > { %s532_s3 = sshll.u32 %s2519_s2, 4  ;;  %s570_s20 = sshll.u32 %s2520_s28, 4  ;;  %s533_s3 = int_to_ptr.vmem [resolvable:$true] %s532_s3  ;;  %s571_s20 = int_to_ptr.vmem [resolvable:$true] %s570_s20 }
  0x6b   : > { %s2422_s26 = scalar_lea.hbm %s3064_s10, 1024 }
  0x6c   : > { %p2423_p10 = scmp.ne.s32.totalorder %s3064_s10, %s2422_s26  ;;  %p2429_p4 = scmp.lt.u32.totalorder %s2422_s26, %s3064_s10 }
  0x6e   : > { %p2425_p12 = pnand %p2423_p10, %p2677_p11 }
  0x70   : > { %p2426_p6 = pneg %p2425_p12 }
  0x72   : > { %p2431_p7 = pnand %p2429_p4, %p2426_p6 }
  0x74   : > { %2434 = shalt.err (!%p2431_p7)
}
  0x75   : > { %s2435_s22 = scalar_lea.vmem %s533_s3, 1024  ;;  %p2443_p2 = scmp.lt.s32.totalorder %s533_s3, %s533_s3 }
  0x76   : > { %p2436_p13 = scmp.ne.s32.totalorder %s533_s3, %s2435_s22  ;;  %p2444_p3 = scmp.lt.s32.totalorder %s2435_s22, %s2435_s22 }
  0x78   : > { %p2438_p0 = pnand %p2436_p13, %p2677_p11  ;;  %p2445_p5 = por %p2444_p3, %p2443_p2 }
  0x7a   : > { %p2439_p1 = pneg %p2438_p0 }
  0x7c   : > { %p2446_p8 = pnand %p2445_p5, %p2439_p1 }
  0x7e   : > { %2449 = shalt.err (!%p2446_p8)
}
  0x7f   : > { %2248 = dma.hbm_to_vmem [thread:$0]  (!%p2661_p9), %s3064_s10, 1024, %s533_s3, [#allocation5], %s2517_s18, %s2517_s18, %s2518_s24  }
  0x80   : > { %s2450_s28 = scalar_lea.hbm %s3070_s16, 1024 }
  0x81   : > { %p2451_p10 = scmp.ne.s32.totalorder %s3070_s16, %s2450_s28  ;;  %p2457_p4 = scmp.lt.u32.totalorder %s2450_s28, %s3070_s16 }
  0x83   : > { %p2453_p12 = pnand %p2451_p10, %p2677_p11 }
  0x85   : > { %p2454_p6 = pneg %p2453_p12 }
  0x87   : > { %p2459_p7 = pnand %p2457_p4, %p2454_p6 }
  0x89   : > { %2462 = shalt.err (!%p2459_p7)
}
  0x8a   : > { %s2463_s7 = scalar_lea.vmem %s571_s20, 1024  ;;  %p2471_p2 = scmp.lt.s32.totalorder %s571_s20, %s571_s20 }
  0x8b   : > { %p2464_p13 = scmp.ne.s32.totalorder %s571_s20, %s2463_s7  ;;  %p2472_p3 = scmp.lt.s32.totalorder %s2463_s7, %s2463_s7 }
  0x8d   : > { %p2466_p0 = pnand %p2464_p13, %p2677_p11  ;;  %p2473_p5 = por %p2472_p3, %p2471_p2 }
  0x8f   : > { %p2467_p1 = pneg %p2466_p0 }
  0x91   : > { %p2474_p8 = pnand %p2473_p5, %p2467_p1 }
  0x93   : > { %2477 = shalt.err (!%p2474_p8)
}
  0x94   : > { %2254 = dma.hbm_to_vmem [thread:$0]  (!%p2661_p9), %s3070_s16, 1024, %s571_s20, [#allocation8], %s2517_s18, %s2517_s18, %s2518_s24  }
  0x95   : > { %p3099_p10 = scmp.ne.s32.totalorder %s3094_s25, 0 }
  0x96   : > { %p3100_p11 = scmp.eq.s32.totalorder (!%p3099_p10), %s2636_s21, 0 }
  0x97   : > { %603 = sbr.rel (%p3099_p10) target bundleno = 1754 (0x6da), region = 92 }
  0x9e   : > { %2491 = dma.done.wait (%p3100_p11), [#allocation3], 1024   ;;  %p3101_p12 = pmov %p3100_p11 }
  0x9f   : > { %p3102_p6 = pmov %p3100_p11 }
  0xa0   : > { %2493 = vsyncadd (%p3101_p12), [#allocation3], 4294966272 }
  0xa1   : > { %2495 = dma.done.wait (%p3102_p6), [#allocation5], 1040   ;;  %p3103_p4 = pmov %p3102_p6 }
  0xa3   : > { %2497 = vsyncadd (%p3103_p4), [#allocation5], 4294966256  ;;  %p3104_p7 = pmov %p3103_p4 }
  0xa4   : > { %p3105_p9 = pmov %p3103_p4 }
  0xa5   : > { %2499 = dma.done.wait (%p3104_p7), [#allocation8], 2048  }
  0xa6   : > { %2501 = vsyncadd (%p3105_p9), [#allocation8], 4294965248  ;;  %p681_p13 = scmp.lt.s32.totalorder %s2636_s21, 1  ;;  %v2521_v0 = vmov 0.0   ;;  %vm2522_vm0 = vmmov 0   ;;  %vm705_vm1 = vcmask 1043456  }
  0xa7   : > { %2029 = vmatprep.subr.bf16.mxu0 %v2521_v0  ;;  %2031 = vmatprep.mubr.msk.bf16.mxu0 %vm2522_vm0, %v2521_v0  ;;  %s3106_s24 = sld [smem:[#allocation19_spill]]  ;;  %s3107_s29 = sld [smem:[#allocation21_spill]]  ;;  %v2298_v5 = vld [vmem:[#allocation2] sm:$0xff]   ;;  %vm701_vm2 = vcmask 64512   ;;  %v2299_v6 = vld [vmem:[#allocation2 + $0x8] sm:$0xff]   ;;  %v2300_v7 = vld [vmem:[#allocation2 + $0x10] sm:$0xff]  }
  0xa8   : > { %s2802_s19 = scalar_select %p681_p13, %s2636_s21, 1  ;;  %2035 = vmatprep.subr.bf16.mxu1 %v2521_v0  ;;  %2051 = vmatprep.mubr.msk.bf16.mxu1 %vm2522_vm0, %v2521_v0  ;;  %v2301_v8 = vld [vmem:[#allocation2 + $0x18] sm:$0xff]   ;;  %v2302_v9 = vld [vmem:[#allocation2 + $0x20] sm:$0xff]   ;;  %v2303_v10 = vld [vmem:[#allocation2 + $0x28] sm:$0xff]   ;;  %vm1633_vm3 = vcmask 39936  }
  0xa9   : > { %2036 = vmatpush3.bf16.msra.mxu1 %v2298_v5  ;;  %v2304_v11 = vld [vmem:[#allocation2 + $0x30] sm:$0xff]   ;;  %v2305_v12 = vld [vmem:[#allocation2 + $0x38] sm:$0xff]   ;;  %v2306_v13 = vld [vmem:[%s3060_s6] sm:$0xff]   ;;  %s3108_s17 = sld [smem:[#allocation22_spill]]  ;;  %s3109_s30 = sld [smem:[#allocation20_spill]] }
  0xaa   : > { %s1884_s25 = sshll.u32 %s2802_s19, 3  ;;  %2037 = vmatprep.subr.bf16.mxu1 %v2521_v0  ;;  %v2307_v14 = vld [vmem:[%s3060_s6 + $0x8] sm:$0xff]   ;;  %v2308_v15 = vld [vmem:[%s3060_s6 + $0x10] sm:$0xff]   ;;  %v2309_v16 = vld [vmem:[%s3060_s6 + $0x18] sm:$0xff]   ;;  %s3110_s3 = sld [smem:[#allocation25_spill]] }
  0xab   : > { %v2310_v17 = vld [vmem:[%s3060_s6 + $0x20] sm:$0xff]   ;;  %v2311_v18 = vld [vmem:[%s3060_s6 + $0x28] sm:$0xff]   ;;  %v2312_v29 = vld [vmem:[%s3060_s6 + $0x30] sm:$0xff]   ;;  %s3111_s27 = sld [smem:[#allocation18_spill]] }
  0xac   : > { %v975_v24 = vld [vmem:[%s3062_s8] sm:$0xf]  ;;  %v2313_v30 = vld [vmem:[%s3060_s6 + $0x38] sm:$0xff]   ;;  %v2315_v40 = vld [vmem:[#allocation6 + $0x8] sm:$0xff]  }
  0xad   : > { %s684_s20 = scalar_lea.vmem %s3106_s24, %s1884_s25  ;;  %v692_v1 = vld [vmem:[%s3107_s29] sm:$0xf]  ;;  %2038 = vmatpush3.bf16.msra.mxu1 %v2299_v6  ;;  %v984_v28 = vsel %vm705_vm1, %v975_v24, 0  ;;  %v2316_v45 = vld [vmem:[#allocation6 + $0x10] sm:$0xff]   ;;  %v2319_v48 = vld [vmem:[#allocation6 + $0x28] sm:$0xff]   ;;  %s672_s24 = sand.u32 1, %s2504_s0  }
  0xae   : > { %v690_v2 = vld [vmem:[%s684_s20] sm:$0xff]  ;;  %v707_v3 = vsel %vm705_vm1, %v692_v1, 0  ;;  %2039 = vmatprep.subr.bf16.mxu1 %v2521_v0  ;;  %v2320_v51 = vld [vmem:[#allocation6 + $0x30] sm:$0xff]   ;;  %v2933_v6 = vld [vmem:[#allocation7 + $0x28] sm:$0xff]   ;;  %s2941_s20 = sshll.u32 %s672_s24, 4 }
  0xaf   : > { %v694_v4 = vpack.c.bf16 %v690_v2, %v690_v2  ;;  %2030 = vmatpush3.bf16.msra.mxu0 %v707_v3  ;;  %v1886_v19 = vld [vmem:[%s3108_s17] ss:$0 sm:$0xff]  ;;  %v2314_v38 = vld [vmem:[#allocation6] sm:$0xff]   ;;  %v2909_v2 = vld [vmem:[#allocation7 + $0x8] sm:$0xff]   ;;  %s2951_s0 = scalar_lea.vmem [#allocation11], %s2941_s20  ;;  %s688_s26 = scalar_lea.vmem %s3109_s30, %s1884_s25 }
  0xb0   : > { %2055 = vmatprep.subr.bf16.mxu0 %v2521_v0  ;;  %v1888_v31 = vld [vmem:[%s3059_s5] ss:$0 sm:$0xff]  ;;  %v2318_v47 = vld [vmem:[#allocation6 + $0x20] sm:$0xff]   ;;  %v2918_v3 = vld [vmem:[#allocation7 + $0x10] sm:$0xff]   ;;  %s674_s22 = scalar_lea.vmem [#allocation10], %s2941_s20 }
  0xb1   : > { %2040 = vmatpush3.bf16.msra.mxu1 %v2300_v7  ;;  %v2317_v46 = vld [vmem:[#allocation6 + $0x18] sm:$0xff]   ;;  %v2904_v62 = vld [vmem:[#allocation7] sm:$0xff]   ;;  %p3112_p0 = scmp.ne.s32.totalorder %s3111_s27, 0 }
  0xb2   : > { %2032 = vmatmul.mubr.msk.bf16.vlgmr.msra.gmra.mrb[0].mxu0 %vm701_vm2, %v694_v4  ;;  %2041 = vmatprep.subr.bf16.mxu1 %v2521_v0  ;;  %v2887_v49 = vld [vmem:[%s3063_s9] ss:$0 sm:$0xff]  ;;  %v2928_v5 = vld [vmem:[#allocation7 + $0x20] sm:$0xff]   ;;  %s1943_s18 = sshll.u32 (%p3112_p0), %s2636_s21, 3  ;;  %s3113_s14 = sld [smem:[#allocation26_spill]] (%p3112_p0) }
  0xb3   : > { %2071 = vmatprep.mubr.msk.bf16.mxu0 %vm2522_vm0, %v2521_v0  ;;  %2056 = vmatpush3.bf16.msra.mxu0 %v2306_v13  ;;  %v2321_v53 = vld [vmem:[#allocation6 + $0x38] sm:$0xff]   ;;  %v2956_v13 = vld [vmem:[#allocation7 + $0x30] sm:$0xff]  }
  0xb4   : > { %2057 = vmatprep.subr.bf16.mxu0 %v2521_v0  ;;  %v1225_v54 = vld [vmem:[%s3066_s12] sm:$0xf] }
  0xb5   : > { %2042 = vmatpush3.bf16.msra.mxu1 %v2301_v8  ;;  %v2898_v56 = vsel %vm705_vm1, %v1225_v54, 0  ;;  %v1897_v57 = vld [vmem:[#allocation4] ss:$0 sm:$0xff] }
  0xb6   : > { %2043 = vmatprep.subr.bf16.mxu1 %v2521_v0  ;;  %v2946_v7 = vld [vmem:[%s3065_s11] ss:$0 sm:$0xff] }
  0xb7   : > { %2058 = vmatpush3.bf16.msra.mxu0 %v2307_v14  ;;  %v2960_v14 = vld [vmem:[#allocation7 + $0x38] sm:$0xff]  }
  0xb8   : > { %2059 = vmatprep.subr.bf16.mxu0 %v2521_v0  ;;  %s1649_s17 = scalar_lea.vmem (%p3112_p0), %s3113_s14, %s1943_s18 }
  0xb9   : > { %2044 = vmatpush3.bf16.msra.mxu1 %v2302_v9 }
  0xba   : > { %2045 = vmatprep.subr.bf16.mxu1 %v2521_v0 }
  0xbb   : > { %2060 = vmatpush3.bf16.msra.mxu0 %v2308_v15  ;;  %v2967_v15 = vld [vmem:[%s3067_s13] ss:$0 sm:$0xff] }
  0xbc   : > { %2061 = vmatprep.subr.bf16.mxu0 %v2521_v0 }
  0xbd   : > { %2046 = vmatpush3.bf16.msra.mxu1 %v2303_v10 }
  0xbe   : > { %2047 = vmatprep.subr.bf16.mxu1 %v2521_v0 }
  0xbf   : > { %2062 = vmatpush3.bf16.msra.mxu0 %v2309_v16 }
  0xc0   : > { %2063 = vmatprep.subr.bf16.mxu0 %v2521_v0 }
  0xc1   : > { %2048 = vmatpush3.bf16.msra.mxu1 %v2304_v11 }
  0xc2   : > { %2049 = vmatprep.subr.bf16.mxu1 %v2521_v0 }
  0xc3   : > { %2064 = vmatpush3.bf16.msra.mxu0 %v2310_v17 }
  0xc4   : > { %2065 = vmatprep.subr.bf16.mxu0 %v2521_v0 }
  0xc5   : > { %2050 = vmatpush3.bf16.msra.mxu1 %v2305_v12 }
  0xc6   : > { %2075 = vmatprep.subr.bf16.mxu1 %v2521_v0 }
  0xc7   : > { %2066 = vmatpush3.bf16.msra.mxu0 %v2311_v18 }
  0xc8   : > { %2067 = vmatprep.subr.bf16.mxu0 %v2521_v0 }
  0xcb   : > { %2068 = vmatpush3.bf16.msra.mxu0 %v2312_v29 }
  0xcc   : > { %2069 = vmatprep.subr.bf16.mxu0 %v2521_v0 }
  0xcf   : > { %2070 = vmatpush3.bf16.msra.mxu0 %v2313_v30  ;;  %v2330_v30 = vld [vmem:[#allocation9] sm:$0xff]  }
  0xd0   : > { %2081 = vmatprep.subr.bf16.mxu0 %v2521_v0 }
 0x185   : > { %v743_v20 = vpop.f32.mrb[0].mxu0 }
 0x186   : > { %v744_v21 = vadd.f32 %v1886_v19, %v743_v20  ;;  %v2033_v22 = vpop.f32.mrb[1].mxu0 }
 0x187   : > { %v746_v23 = vpop.f32.mrb[2].mxu0 }
 0x188   : > { %v749_v25 = vmax.f32 %v744_v21, 0.0  ;;  %v2034_v26 = vpop.f32.mrb[3].mxu0 }
 0x18a   : > { %v767_v27 = vpack.c.bf16 %v749_v25, %v749_v25 }
 0x18c   : > { %2052 = vmatmul.mubr.bf16.vlgmr.msra.gmra.mrb[0].mxu1 %v767_v27 }
 0x18d   : > { %2076 = vmatpush3.bf16.msra.mxu1 %v984_v28  ;;  %2077 = vmatprep.mubr.msk.bf16.mxu1 %vm2522_vm0, %v2521_v0 }
 0x18e   : > { %2101 = vmatprep.subr.bf16.mxu1 %v2521_v0 }
 0x194   : > { %2078 = vmatmul.mubr.msk.bf16.vlgmr.msra.gmra.mrb[4].mxu1 %vm701_vm2, %v694_v4  ;;  %v2923_v4 = vld [vmem:[#allocation7 + $0x18] sm:$0xff]  }
 0x195   : > { %2102 = vmatpush3.bf16.msra.mxu1 %v984_v28  ;;  %2103 = vmatprep.mubr.msk.bf16.mxu1 %vm2522_vm0, %v2521_v0 }
 0x196   : > { %2107 = vmatprep.subr.bf16.mxu1 %v2521_v0 }
 0x25f   : > { %v856_v32 = vpop.f32.mrb[0].mxu1 }
 0x260   : > { %v857_v33 = vadd.f32 %v1888_v31, %v856_v32  ;;  %v2053_v34 = vpop.f32.mrb[1].mxu1  ;;  %v691_v31 = vld [vmem:[%s688_s26] sm:$0xff]  ;;  %v2331_v32 = vld [vmem:[#allocation9 + $0x8] sm:$0xff]  }
 0x261   : > { %v859_v35 = vpop.f32.mrb[2].mxu1  ;;  %v2332_v34 = vld [vmem:[#allocation9 + $0x10] sm:$0xff]  }
 0x262   : > { %v862_v36 = vmax.f32 %v857_v33, 0.0  ;;  %v2054_v37 = vpop.f32.mrb[3].mxu1  ;;  %v1502_v33 = vpack.c.bf16 %v691_v31, %v691_v31  ;;  %v2333_v35 = vld [vmem:[#allocation9 + $0x18] sm:$0xff]  }
 0x263   : > { %v2335_v37 = vld [vmem:[#allocation9 + $0x28] sm:$0xff]  }
 0x264   : > { %v880_v39 = vpack.c.bf16 %v862_v36, %v862_v36  ;;  %v2334_v36 = vld [vmem:[#allocation9 + $0x20] sm:$0xff]  }
 0x266   : > { %2072 = vmatmul.mubr.bf16.vlgmr.msra.gmra.mrb[4].mxu0 %v880_v39  ;;  %v2337_v39 = vld [vmem:[#allocation9 + $0x38] sm:$0xff]  }
 0x267   : > { %2082 = vmatpush3.bf16.msra.mxu0 %v2314_v38  ;;  %v1020_v41 = vpop.f32.mrb[4].mxu1  ;;  %2097 = vmatprep.mubr.msk.bf16.mxu0 %vm2522_vm0, %v2521_v0 }
 0x268   : > { %2083 = vmatprep.subr.bf16.mxu0 %v2521_v0  ;;  %v2079_v42 = vpop.f32.mrb[5].mxu1  ;;  %v1021_v50 = vadd.f32 %v2887_v49, %v1020_v41 }
 0x269   : > { %v1023_v43 = vpop.f32.mrb[6].mxu1 }
 0x26a   : > { %v2080_v44 = vpop.f32.mrb[7].mxu1  ;;  %v1026_v52 = vmax.f32 %v1021_v50, 0.0 }
 0x26b   : > { %2084 = vmatpush3.bf16.msra.mxu0 %v2315_v40 }
 0x26c   : > { %2085 = vmatprep.subr.bf16.mxu0 %v2521_v0  ;;  %v1044_v55 = vpack.c.bf16 %v1026_v52, %v1026_v52 }
 0x26f   : > { %2086 = vmatpush3.bf16.msra.mxu0 %v2316_v45 }
 0x270   : > { %2087 = vmatprep.subr.bf16.mxu0 %v2521_v0 }
 0x273   : > { %2088 = vmatpush3.bf16.msra.mxu0 %v2317_v46 }
 0x274   : > { %2089 = vmatprep.subr.bf16.mxu0 %v2521_v0 }
 0x277   : > { %2090 = vmatpush3.bf16.msra.mxu0 %v2318_v47 }
 0x278   : > { %2091 = vmatprep.subr.bf16.mxu0 %v2521_v0 }
 0x27b   : > { %2092 = vmatpush3.bf16.msra.mxu0 %v2319_v48 }
 0x27c   : > { %2093 = vmatprep.subr.bf16.mxu0 %v2521_v0 }
 0x27f   : > { %2094 = vmatpush3.bf16.msra.mxu0 %v2320_v51 }
 0x280   : > { %2095 = vmatprep.subr.bf16.mxu0 %v2521_v0 }
 0x283   : > { %2096 = vmatpush3.bf16.msra.mxu0 %v2321_v53 }
 0x284   : > { %2127 = vmatprep.subr.bf16.mxu0 %v2521_v0 }
 0x286   : > { %2098 = vmatmul.mubr.bf16.vlgmr.msra.gmra.mrb[8].mxu0 %v1044_v55 }
 0x287   : > { %2128 = vmatpush3.bf16.msra.mxu0 %v2898_v56  ;;  %2129 = vmatprep.mubr.msk.bf16.mxu0 %vm2522_vm0, %v2521_v0 }
 0x288   : > { %2133 = vmatprep.subr.bf16.mxu0 %v2521_v0 }
 0x339   : > { %v969_v58 = vpop.f32.mrb[4].mxu0 }
 0x33a   : > { %v970_v59 = vadd.f32 %v1897_v57, %v969_v58  ;;  %v2073_v60 = vpop.f32.mrb[5].mxu0 }
 0x33b   : > { %v972_v61 = vpop.f32.mrb[6].mxu0  ;;  %v1929_v60 = vld [vmem:[%s3110_s3] ss:$0 sm:$0xff] }
 0x33c   : > { %v1139_v63 = vpack.c.bf16 %v970_v59, %v970_v59  ;;  %v2074_v1 = vpop.f32.mrb[7].mxu0 }
 0x33e   : > { %2104 = vmatmul.mubr.msk.bf16.vlgmr.msra.gmra.mrb[8].mxu1 %vm701_vm2, %v1139_v63  ;;  %2130 = vmatmul.mubr.msk.bf16.vlgmr.msra.gmra.mrb[12].mxu0 %vm701_vm2, %v1139_v63 }
 0x33f   : > { %2108 = vmatpush3.bf16.msra.mxu1 %v2314_v38  ;;  %2134 = vmatpush3.bf16.msra.mxu0 %v2904_v62  ;;  %v2336_v38 = vld [vmem:[#allocation9 + $0x30] sm:$0xff]  }
 0x340   : > { %2109 = vmatprep.subr.bf16.mxu1 %v2521_v0  ;;  %2135 = vmatprep.subr.bf16.mxu0 %v2521_v0 }
 0x341   : > { %2123 = vmatprep.mubr.msk.bf16.mxu1 %vm2522_vm0, %v2521_v0  ;;  %2149 = vmatprep.mubr.msk.bf16.mxu0 %vm2522_vm0, %v2521_v0 }
 0x343   : > { %2110 = vmatpush3.bf16.msra.mxu1 %v2315_v40  ;;  %2136 = vmatpush3.bf16.msra.mxu0 %v2909_v2  ;;  %v1920_v40 = vld [vmem:[%s3069_s15] ss:$0 sm:$0xff] }
 0x344   : > { %2111 = vmatprep.subr.bf16.mxu1 %v2521_v0  ;;  %2137 = vmatprep.subr.bf16.mxu0 %v2521_v0 }
 0x347   : > { %2112 = vmatpush3.bf16.msra.mxu1 %v2316_v45  ;;  %2138 = vmatpush3.bf16.msra.mxu0 %v2918_v3 }
 0x348   : > { %2113 = vmatprep.subr.bf16.mxu1 %v2521_v0  ;;  %2139 = vmatprep.subr.bf16.mxu0 %v2521_v0 }
 0x34b   : > { %2114 = vmatpush3.bf16.msra.mxu1 %v2317_v46  ;;  %2140 = vmatpush3.bf16.msra.mxu0 %v2923_v4 }
 0x34c   : > { %2115 = vmatprep.subr.bf16.mxu1 %v2521_v0  ;;  %2141 = vmatprep.subr.bf16.mxu0 %v2521_v0 }
 0x34f   : > { %2116 = vmatpush3.bf16.msra.mxu1 %v2318_v47  ;;  %2142 = vmatpush3.bf16.msra.mxu0 %v2928_v5 }
 0x350   : > { %2117 = vmatprep.subr.bf16.mxu1 %v2521_v0  ;;  %2143 = vmatprep.subr.bf16.mxu0 %v2521_v0 }
 0x353   : > { %2118 = vmatpush3.bf16.msra.mxu1 %v2319_v48  ;;  %2144 = vmatpush3.bf16.msra.mxu0 %v2933_v6 }
 0x354   : > { %2119 = vmatprep.subr.bf16.mxu1 %v2521_v0  ;;  %2145 = vmatprep.subr.bf16.mxu0 %v2521_v0 }
 0x357   : > { %2120 = vmatpush3.bf16.msra.mxu1 %v2320_v51  ;;  %2146 = vmatpush3.bf16.msra.mxu0 %v2956_v13 }
 0x358   : > { %2121 = vmatprep.subr.bf16.mxu1 %v2521_v0  ;;  %2147 = vmatprep.subr.bf16.mxu0 %v2521_v0 }
 0x359   : > { %v1133_v8 = vpop.f32.mrb[8].mxu0 }
 0x35a   : > { %v1134_v9 = vadd.f32 %v2946_v7, %v1133_v8  ;;  %v2099_v10 = vpop.f32.mrb[9].mxu0 }
 0x35b   : > { %v1136_v11 = vpop.f32.mrb[10].mxu0  ;;  %2122 = vmatpush3.bf16.msra.mxu1 %v2321_v53  ;;  %2148 = vmatpush3.bf16.msra.mxu0 %v2960_v14 }
 0x35c   : > { %1634 = vst.msk [vmem:[%s2951_s0] sm:$0xff] %vm1633_vm3, %v1134_v9  ;;  %v2100_v12 = vpop.f32.mrb[11].mxu0  ;;  %2153 = vmatprep.subr.bf16.mxu1 %v2521_v0  ;;  %2173 = vmatprep.subr.bf16.mxu0 %v2521_v0 }
 0x411   : > { %v1177_v16 = vpop.f32.mrb[8].mxu1  ;;  %v1270_v17 = vpop.f32.mrb[12].mxu0 }
 0x412   : > { %v1178_v18 = vadd.f32 %v2887_v49, %v1177_v16  ;;  %v1271_v19 = vadd.f32 %v2967_v15, %v1270_v17  ;;  %v2105_v20 = vpop.f32.mrb[9].mxu1  ;;  %v2131_v21 = vpop.f32.mrb[13].mxu0 }
 0x413   : > { %v1180_v22 = vpop.f32.mrb[10].mxu1  ;;  %v1273_v23 = vpop.f32.mrb[14].mxu0 }
 0x414   : > { %v1183_v24 = vmax.f32 %v1178_v18, 0.0  ;;  %v1276_v25 = vmax.f32 %v1271_v19, 0.0  ;;  %v2106_v26 = vpop.f32.mrb[11].mxu1  ;;  %v2132_v27 = vpop.f32.mrb[15].mxu0 }
 0x416   : > { %v1184_v28 = vpack.c.bf16 %v1183_v24, %v1183_v24  ;;  %v1294_v29 = vpack.c.bf16 %v1276_v25, %v1276_v25 }
 0x418   : > { %2124 = vmatmul.mubr.bf16.vlgmr.msra.gmra.mrb[12].mxu1 %v1184_v28  ;;  %2150 = vmatmul.mubr.bf16.vlgmr.msra.gmra.mrb[16].mxu0 %v1294_v29 }
 0x419   : > { %2174 = vmatpush3.bf16.msra.mxu0 %v2898_v56  ;;  %2175 = vmatprep.mubr.msk.bf16.mxu0 %vm2522_vm0, %v2521_v0 }
 0x41a   : > { %2154 = vmatpush3.bf16.msra.mxu1 %v2330_v30  ;;  %2169 = vmatprep.mubr.msk.bf16.mxu1 %vm2522_vm0, %v2521_v0 }
 0x41b   : > { %2155 = vmatprep.subr.bf16.mxu1 %v2521_v0  ;;  %2199 = vmatprep.subr.bf16.mxu0 %v2521_v0 }
 0x41e   : > { %2156 = vmatpush3.bf16.msra.mxu1 %v2331_v32 }
 0x41f   : > { %2157 = vmatprep.subr.bf16.mxu1 %v2521_v0 }
 0x420   : > { %2176 = vmatmul.mubr.msk.bf16.vlgmr.msra.gmra.mrb[20].mxu0 %vm701_vm2, %v1502_v33 }
 0x421   : > { %2200 = vmatpush3.bf16.msra.mxu0 %v2330_v30  ;;  %2215 = vmatprep.mubr.msk.bf16.mxu0 %vm2522_vm0, %v2521_v0 }
 0x422   : > { %2158 = vmatpush3.bf16.msra.mxu1 %v2332_v34  ;;  %2201 = vmatprep.subr.bf16.mxu0 %v2521_v0 }
 0x423   : > { %2159 = vmatprep.subr.bf16.mxu1 %v2521_v0 }
 0x425   : > { %2202 = vmatpush3.bf16.msra.mxu0 %v2331_v32 }
 0x426   : > { %2160 = vmatpush3.bf16.msra.mxu1 %v2333_v35  ;;  %2203 = vmatprep.subr.bf16.mxu0 %v2521_v0 }
 0x427   : > { %2161 = vmatprep.subr.bf16.mxu1 %v2521_v0 }
 0x429   : > { %2204 = vmatpush3.bf16.msra.mxu0 %v2332_v34 }
 0x42a   : > { %2162 = vmatpush3.bf16.msra.mxu1 %v2334_v36  ;;  %2205 = vmatprep.subr.bf16.mxu0 %v2521_v0 }
 0x42b   : > { %2163 = vmatprep.subr.bf16.mxu1 %v2521_v0 }
 0x42d   : > { %2206 = vmatpush3.bf16.msra.mxu0 %v2333_v35 }
 0x42e   : > { %2164 = vmatpush3.bf16.msra.mxu1 %v2335_v37  ;;  %2207 = vmatprep.subr.bf16.mxu0 %v2521_v0 }
 0x42f   : > { %2165 = vmatprep.subr.bf16.mxu1 %v2521_v0 }
 0x431   : > { %2208 = vmatpush3.bf16.msra.mxu0 %v2334_v36 }
 0x432   : > { %2166 = vmatpush3.bf16.msra.mxu1 %v2336_v38  ;;  %2209 = vmatprep.subr.bf16.mxu0 %v2521_v0 }
 0x433   : > { %2167 = vmatprep.subr.bf16.mxu1 %v2521_v0 }
 0x435   : > { %2210 = vmatpush3.bf16.msra.mxu0 %v2335_v37 }
 0x436   : > { %2211 = vmatprep.subr.bf16.mxu0 %v2521_v0  ;;  %2168 = vmatpush3.bf16.msra.mxu1 %v2337_v39 }
 0x437   : > { %2179 = vmatprep.subr.bf16.mxu1 %v2521_v0 }
 0x439   : > { %2212 = vmatpush3.bf16.msra.mxu0 %v2336_v38 }
 0x43a   : > { %2213 = vmatprep.subr.bf16.mxu0 %v2521_v0 }
 0x43d   : > { %2214 = vmatpush3.bf16.msra.mxu0 %v2337_v39 }
 0x4eb   : > { %v1219_v41 = vpop.f32.mrb[12].mxu1  ;;  %v1383_v42 = vpop.f32.mrb[16].mxu0 }
 0x4ec   : > { %v1220_v43 = vadd.f32 %v2946_v7, %v1219_v41  ;;  %v1384_v44 = vadd.f32 %v1920_v40, %v1383_v42  ;;  %v2125_v45 = vpop.f32.mrb[13].mxu1  ;;  %v2151_v46 = vpop.f32.mrb[17].mxu0 }
 0x4ed   : > { %v1222_v47 = vpop.f32.mrb[14].mxu1  ;;  %v1386_v48 = vpop.f32.mrb[18].mxu0 }
 0x4ee   : > { %1940 = vst.msk [vmem:[%s2951_s0 + $0x8] sm:$0xff] %vm1633_vm3, %v1220_v43  ;;  %v1389_v49 = vmax.f32 %v1384_v44, 0.0  ;;  %v2126_v50 = vpop.f32.mrb[15].mxu1  ;;  %v2152_v51 = vpop.f32.mrb[19].mxu0 }
 0x4f0   : > { %v1407_v52 = vpack.c.bf16 %v1389_v49, %v1389_v49 }
 0x4f2   : > { %2170 = vmatmul.mubr.bf16.vlgmr.msra.gmra.mrb[16].mxu1 %v1407_v52 }
 0x4f3   : > { %2180 = vmatpush3.bf16.msra.mxu1 %v2904_v62  ;;  %v1540_v53 = vpop.f32.mrb[20].mxu0  ;;  %2195 = vmatprep.mubr.msk.bf16.mxu1 %vm2522_vm0, %v2521_v0 }
 0x4f4   : > { %2181 = vmatprep.subr.bf16.mxu1 %v2521_v0  ;;  %v2177_v54 = vpop.f32.mrb[21].mxu0  ;;  %v1541_v57 = vadd.f32 %v2967_v15, %v1540_v53 }
 0x4f5   : > { %v1543_v55 = vpop.f32.mrb[22].mxu0 }
 0x4f6   : > { %v2178_v56 = vpop.f32.mrb[23].mxu0  ;;  %v1546_v58 = vmax.f32 %v1541_v57, 0.0 }
 0x4f7   : > { %2182 = vmatpush3.bf16.msra.mxu1 %v2909_v2 }
 0x4f8   : > { %2183 = vmatprep.subr.bf16.mxu1 %v2521_v0  ;;  %v1547_v59 = vpack.c.bf16 %v1546_v58, %v1546_v58 }
 0x4fb   : > { %2184 = vmatpush3.bf16.msra.mxu1 %v2918_v3 }
 0x4fc   : > { %2185 = vmatprep.subr.bf16.mxu1 %v2521_v0 }
 0x4ff   : > { %2186 = vmatpush3.bf16.msra.mxu1 %v2923_v4 }
 0x500   : > { %2187 = vmatprep.subr.bf16.mxu1 %v2521_v0 }
 0x503   : > { %2188 = vmatpush3.bf16.msra.mxu1 %v2928_v5 }
 0x504   : > { %2189 = vmatprep.subr.bf16.mxu1 %v2521_v0 }
 0x507   : > { %2190 = vmatpush3.bf16.msra.mxu1 %v2933_v6 }
 0x508   : > { %2191 = vmatprep.subr.bf16.mxu1 %v2521_v0 }
 0x50b   : > { %2192 = vmatpush3.bf16.msra.mxu1 %v2956_v13 }
 0x50c   : > { %2193 = vmatprep.subr.bf16.mxu1 %v2521_v0 }
 0x50f   : > { %2194 = vmatpush3.bf16.msra.mxu1 %v2960_v14 }
 0x512   : > { %2196 = vmatmul.mubr.bf16.vlgmr.msra.gmra.mrb[20].mxu1 %v1547_v59 }
 0x5c5   : > { %v1496_v61 = vpop.f32.mrb[16].mxu1 }
 0x5c6   : > { %v1497_v62 = vadd.f32 %v1929_v60, %v1496_v61  ;;  %v2171_v63 = vpop.f32.mrb[17].mxu1 }
 0x5c7   : > { %v1499_v1 = vpop.f32.mrb[18].mxu1 }
 0x5c8   : > { %1630 = vst.msk [vmem:[%s674_s22] sm:$0xff] %vm701_vm2, %v1497_v62  ;;  %v2172_v2 = vpop.f32.mrb[19].mxu1 }
 0x5cf   : > { %v1679_v14 = vld [vmem:[%s674_s22] sm:$0xff] (%p3112_p0) }
 0x5d0   : > { %1680 = vst [vmem:[%s1649_s17] sm:$0xff] (%p3112_p0), %v1679_v14 }
 0x5e5   : > { %v1582_v3 = vpop.f32.mrb[20].mxu1 }
 0x5e6   : > { %v1583_v4 = vadd.f32 %v1920_v40, %v1582_v3  ;;  %v2197_v5 = vpop.f32.mrb[21].mxu1 }
 0x5e7   : > { %v1585_v0 = vpop.f32.mrb[22].mxu1 }
 0x5e8   : > { %v1588_v6 = vmax.f32 %v1583_v4, 0.0  ;;  %v2198_v7 = vpop.f32.mrb[23].mxu1 }
 0x5ea   : > { %v1589_v8 = vpack.c.bf16 %v1588_v6, %v1588_v6 }
 0x5ec   : > { %2216 = vmatmul.mubr.bf16.vlgmr.msra.gmra.mrb[24].mxu0 %v1589_v8 }
 0x6bc   : > { %1647 = sbr.rel (!%p3112_p0) target bundleno = 1739 (0x6cb), region = 116 }
 0x6bf   : > { %v1624_v9 = vpop.f32.mrb[24].mxu0 }
 0x6c0   : > { %v1625_v10 = vadd.f32 %v1929_v60, %v1624_v9  ;;  %v2217_v11 = vpop.f32.mrb[25].mxu0 }
 0x6c1   : > { %v1627_v12 = vpop.f32.mrb[26].mxu0 }
 0x6c2   : > { %1939 = vst.msk [vmem:[%s674_s22 + $0x8] sm:$0xff] %vm701_vm2, %v1625_v10  ;;  %v2218_v13 = vpop.f32.mrb[27].mxu0 }
 0x6c9   : > { %v1681_v15 = vld [vmem:[%s674_s22 + $0x8] sm:$0xff] }
 0x6ca   : > { %1682 = vst [vmem:[%s1649_s17 + $0x10] sm:$0xff] %v1681_v15 }
 0x6cb PF: > { %s3114_s29 = sld [smem:[#allocation18_spill]] }
 0x6d1   : > { %p3115_p1 = scmp.ne.s32.totalorder %s3114_s29, 0 }
 0x6d2   : > { %s1944_s2 = sshll.u32 (%p3115_p1), %s2636_s21, 3  ;;  %v1720_v16 = vld [vmem:[%s2951_s0] sm:$0xff] (%p3115_p1)  ;;  %v1722_v17 = vld [vmem:[%s2951_s0 + $0x8] sm:$0xff] (%p3115_p1)  ;;  %s3116_s30 = sld [smem:[#allocation27_spill]] (%p3115_p1) }
 0x6d3   : > { %1688 = sbr.rel (!%p3115_p1) target bundleno = 1754 (0x6da), region = 154 }
 0x6d8   : > { %s1690_s26 = scalar_lea.vmem (%p3115_p1), %s3116_s30, %s1944_s2 }
 0x6d9   : > { %1721 = vst [vmem:[%s1690_s26] sm:$0xff] (%p3115_p1), %v1720_v16  ;;  %1723 = vst [vmem:[%s1690_s26 + $0x10] sm:$0xff] (%p3115_p1), %v1722_v17 }
 0x6da PF: > { %s3117_s20 = sld [smem:[#allocation16_spill]]  ;;  %s3118_s0 = sld [smem:[#allocation15_spill]] }
 0x6db   : > { %s3119_s30 = sld [smem:[#allocation17_spill]] }
 0x6e0   : > { %p30_p2 = scmp.ge.s32.totalorder %s3117_s20, 4  }
 0x6e2   :  { %32 = sbr.rel (!%p30_p2) target bundleno = 14 (0xe), region = 236 }
 0x6e9   :  { %1746 = vsyncpa [#allocation3], 1 }
 0x6ea   :  { %1748 = vsyncpa [#allocation3 + $0x1], 1 }
 0x6eb   :  { %1749 = vsyncpa [#allocation5], 1 }
 0x6ec   :  { %1750 = vsyncpa [#allocation8], 1 }

</bundles_post_ra>
